<compile_context>
chip_gen: v6e
topology: v6e:2x2x1
jax: 0.10.0
libtpu: 0.0.40
codegen_flags: <defaults>
</compile_context>

<pallas_src>
import functools

import jax
import jax.numpy as jnp
from jax import lax
from jax.experimental import pallas as pl
from jax.experimental.pallas import tpu as pltpu

LANE = 128
SUB = 8


def _round_up(x, m):
    return (x + m - 1) // m * m


def _pad2d(a, rows, cols):
    r, c = a.shape
    return jnp.pad(a, ((0, rows - r), (0, cols - c)))


def _nbytes(a):
    return int(a.size) * a.dtype.itemsize


# --------------------- fused whole-network GAT kernel ---------------------
# Per layer: feat Linear -> stacked one-hot gather (self + K nbrs, one MXU dot)
# -> streamed online softmax over K -> NodeUpdate; then the final fc.

def _gat_network_kernel(*refs, num_layers, k, neg_slope):
    x_ref = refs[0]
    tgt_refs = refs[1:1 + num_layers]
    w_refs = refs[1 + num_layers:1 + 6 * num_layers]
    wo_ref = refs[1 + 6 * num_layers]
    bo_ref = refs[2 + 6 * num_layers]
    o_ref = refs[3 + 6 * num_layers]
    mail_ref = refs[4 + 6 * num_layers]        # VMEM mailbox scratch

    h_src = x_ref[...]                          # [Ns0, D0p] f32 source feats

    for l in range(num_layers):
        wf_ref, bf_ref, wgs_ref, wgn_ref, bg_ref = w_refs[5 * l:5 * l + 5]
        rows = tgt_refs[l].shape[0]             # (K+1) * Ndp (slot-major)
        ndp = rows // (k + 1)
        ns = h_src.shape[0]
        hp = wf_ref.shape[1]

        # ---- feat linear over ALL source rows (runs exactly once per layer).
        # The a1·h / a2·h attention scores are baked into the two last padded
        # columns of wf/bf, so they come out of this matmul for free.
        h = (jnp.dot(h_src.astype(jnp.bfloat16), wf_ref[...],
                     preferred_element_type=jnp.float32) + bf_ref[...])
        hb = h.astype(jnp.bfloat16)             # [Ns, Hp]

        # ---- stacked one-hot gather: self + K neighbor slots in ONE MXU dot,
        # landed in the VMEM mailbox scratch (not K+1 live vreg tiles).
        tgt = tgt_refs[l][...]                  # [(K+1)*Ndp, 1] int32
        iota = lax.broadcasted_iota(jnp.int32, (rows, ns), 1)
        sel = jnp.where(iota == tgt, 1.0, 0.0).astype(jnp.bfloat16)
        mail_ref[0:rows, :] = jnp.dot(sel, hb, preferred_element_type=jnp.float32)

        # slot 0 = destination nodes' own features
        self_h = mail_ref[0:ndp, :]             # [Ndp, Hp] f32
        e_dst = self_h[:, hp - 2:hp - 1]        # a2·h_self (baked column)

        # ---- streamed online softmax + weighted message sum over K neighbors:
        # each mailbox tile is loaded from VMEM exactly once; ~2 tiles live.
        m = jnp.full((ndp, 1), -jnp.inf, dtype=jnp.float32)
        denom = jnp.zeros((ndp, 1), dtype=jnp.float32)
        acc = jnp.zeros((ndp, hp), dtype=jnp.float32)
        for j in range(1, k + 1):
            hj = mail_ref[j * ndp:(j + 1) * ndp, :]
            e = hj[:, hp - 1:hp] + e_dst        # a1·h_nbr + a2·h_self
            e = jnp.where(e >= 0.0, e, neg_slope * e)   # leaky_relu
            m_new = jnp.maximum(m, e)
            scale = jnp.exp(m - m_new)
            p = jnp.exp(e - m_new)
            denom = scale * denom + p
            acc = scale * acc + p * hj
            m = m_new
        h_red = acc * pl.reciprocal(denom, approx=True)   # EUP divide

        # ---- NodeUpdate without concatenate:
        #   relu(cat(self_h, h_red - self_h) @ Wg + bg)
        # = relu(self_h @ (Wg_top - Wg_bot) + h_red @ Wg_bot + bg)
        # (garbage in the score lanes is killed by the zero rows of Wg*).
        y = (jnp.dot(self_h.astype(jnp.bfloat16), wgs_ref[...],
                     preferred_element_type=jnp.float32)
             + jnp.dot(h_red.astype(jnp.bfloat16), wgn_ref[...],
                       preferred_element_type=jnp.float32)
             + bg_ref[...])
        h_src = jnp.maximum(y, 0.0)             # next layer's source activations

    # ---- final fc ---------------------------------------------------------
    out = (jnp.dot(h_src.astype(jnp.bfloat16), wo_ref[...],
                   preferred_element_type=jnp.float32) + bo_ref[...])
    o_ref[...] = out.astype(o_ref.dtype)


def gat_network(x, tgts, layer_weights, wo, bo, *, k):
    """Single fused pallas_call for all GAT layers + fc.

    x:   [Ns0_pad, D0_pad] f32 padded node features.
    tgts: per layer [(K+1)*Ndp, 1] int32 slot-major gather targets
          (slot 0 = self index, slots 1..K = sampled neighbors).
    """
    num_layers = len(tgts)
    hp, cp = wo.shape
    nd_last_pad = int(tgts[-1].shape[0]) // (k + 1)
    max_rows = max(int(t.shape[0]) for t in tgts)

    inputs, in_specs = [], []

    def add(a):
        inputs.append(a)
        in_specs.append(pl.BlockSpec(a.shape, lambda i: (0, 0)))

    add(x)
    for t in tgts:
        add(t)
    for lw in layer_weights:            # (wf, bf, wgs, wgn, bg) per layer
        for a in lw:
            add(a)
    add(wo)
    add(bo)

    # Cost estimate matching the real (fused, single-pass) schedule.
    flops, trans = 0, 0
    ns, dp = int(x.shape[0]), int(x.shape[1])
    for t in tgts:
        rows = int(t.shape[0])
        ndp = rows // (k + 1)
        flops += 2 * ns * dp * hp            # feat linear (once)
        flops += 2 * rows * ns * hp          # stacked one-hot gather
        flops += 2 * ndp * hp * hp * 2       # NodeUpdate (two dots)
        trans += ndp * (2 * k + 1)           # exps + reciprocal
        ns, dp = ndp, hp
    flops += 2 * ns * hp * cp                # fc
    bytes_accessed = sum(_nbytes(a) for a in inputs) + nd_last_pad * cp * 4
    cost = pl.CostEstimate(flops=int(flops), transcendentals=int(trans),
                           bytes_accessed=int(bytes_accessed))

    return pl.pallas_call(
        functools.partial(_gat_network_kernel, num_layers=num_layers, k=k,
                          neg_slope=0.01),
        out_shape=jax.ShapeDtypeStruct((nd_last_pad, cp), jnp.float32),
        grid=(1,),
        in_specs=in_specs,
        out_specs=pl.BlockSpec((nd_last_pad, cp), lambda i: (0, 0)),
        scratch_shapes=[pltpu.VMEM((max_rows, hp), jnp.float32)],  # mailbox
        compiler_params=pltpu.CompilerParams(
            dimension_semantics=("arbitrary",),
            vmem_limit_bytes=32 * 1024 * 1024),
        cost_estimate=cost,
    )(*inputs)


# ----------------------------- parameters -----------------------------

def init_raw_params(key, in_dim, hidden_dim, num_class, num_layers):
    """Unpadded parameters with the same structure as the torch module
    (weights stored pre-transposed: W^T [d_in, d_out])."""
    scale = 0.1
    p = {"feat": [], "attn": [], "gcn": []}
    for i in range(num_layers):
        d_in = in_dim if i == 0 else hidden_dim
        key, k1, k2, k3, k4, k5 = jax.random.split(key, 6)
        p["feat"].append((scale * jax.random.normal(k1, (d_in, hidden_dim), jnp.float32),
                          scale * jax.random.normal(k2, (1, hidden_dim), jnp.float32)))
        p["attn"].append(scale * jax.random.normal(k3, (1, 2 * hidden_dim), jnp.float32))
        p["gcn"].append((scale * jax.random.normal(k4, (2 * hidden_dim, hidden_dim), jnp.float32),
                         scale * jax.random.normal(k5, (1, hidden_dim), jnp.float32)))
    key, k1, k2 = jax.random.split(key, 3)
    p["fc"] = (scale * jax.random.normal(k1, (hidden_dim, num_class), jnp.float32),
               scale * jax.random.normal(k2, (1, num_class), jnp.float32))
    return p


def pad_params(raw, hidden_dim, num_class):
    """Zero-pad feature dims to multiples of 128, bake a1·h / a2·h attention
    scores into the last two feat-weight columns, split Wg into
    (Wg_top - Wg_bot, Wg_bot) for a concat-free NodeUpdate, and pre-cast all
    matmul weights to bf16 (biases stay f32)."""
    hp = _round_up(hidden_dim + 2, LANE)      # 2 spare lanes for the scores
    cp = _round_up(num_class, LANE)
    layers = []
    for li, ((wf, bf), a, (wg, bg)) in enumerate(zip(raw["feat"], raw["attn"], raw["gcn"])):
        d_in = wf.shape[0]
        dp = _round_up(d_in, LANE) if li == 0 else hp
        a1 = a[0, :hidden_dim]
        a2 = a[0, hidden_dim:]
        wf_p = jnp.zeros((dp, hp), jnp.float32)
        wf_p = wf_p.at[:d_in, :hidden_dim].set(wf)
        wf_p = wf_p.at[:d_in, hp - 1].set(wf @ a1)     # a1·h score column
        wf_p = wf_p.at[:d_in, hp - 2].set(wf @ a2)     # a2·h score column
        bf_p = jnp.zeros((1, hp), jnp.float32)
        bf_p = bf_p.at[0, :hidden_dim].set(bf[0])
        bf_p = bf_p.at[0, hp - 1].set(bf[0] @ a1)
        bf_p = bf_p.at[0, hp - 2].set(bf[0] @ a2)
        wg_top, wg_bot = wg[:hidden_dim], wg[hidden_dim:]
        wgs_p = jnp.zeros((hp, hp), jnp.float32).at[:hidden_dim, :hidden_dim].set(wg_top - wg_bot)
        wgn_p = jnp.zeros((hp, hp), jnp.float32).at[:hidden_dim, :hidden_dim].set(wg_bot)
        bg_p = _pad2d(bg, 1, hp)
        layers.append((wf_p.astype(jnp.bfloat16), bf_p,
                       wgs_p.astype(jnp.bfloat16), wgn_p.astype(jnp.bfloat16), bg_p))
    wo, bo = raw["fc"]
    return {"layers": layers,
            "fc": (_pad2d(wo, hp, cp).astype(jnp.bfloat16), _pad2d(bo, 1, cp))}


# ----------------------------- forward passes -----------------------------

def gat_train_forward(padded, node_features, nbr_idx_list, self_idx_list, num_class):
    n0, d0 = node_features.shape
    x = _pad2d(node_features, _round_up(n0, SUB), _round_up(d0, LANE))
    k = int(nbr_idx_list[0].shape[1])

    # slot-major gather targets: slot 0 = self index, slots 1..K = neighbors
    tgts = []
    for nbr, self_idx in zip(nbr_idx_list, self_idx_list):
        nbr = nbr.astype(jnp.int32)
        self_idx = self_idx.astype(jnp.int32)
        nd = nbr.shape[0]
        nd_pad = _round_up(nd, SUB)
        idx = jnp.concatenate([self_idx[:, None], nbr], axis=1)       # [Nd, K+1]
        idx = jnp.pad(idx, ((0, nd_pad - nd), (0, 0)))
        tgts.append(jnp.transpose(idx).reshape(((k + 1) * nd_pad, 1)))

    wo, bo = padded["fc"]
    out = gat_network(x, tgts, padded["layers"], wo, bo, k=k)
    nd_last = int(nbr_idx_list[-1].shape[0])
    return out[:nd_last, :num_class]


def _ref_dot(a, b):
    return jnp.dot(a, b, precision=lax.Precision.HIGHEST)


def reference_forward(raw, node_features, nbr_idx_list, self_idx_list):
    """Pure-JAX mirror of the PyTorch GATTrain forward (for verification)."""
    h = node_features
    for (wf, bf), a, (wg, bg), nbr, self_idx in zip(raw["feat"], raw["attn"],
                                                    raw["gcn"], nbr_idx_list,
                                                    self_idx_list):
        hidden = wf.shape[1]
        h = _ref_dot(h, wf) + bf                              # feat_layer (dropout=id)
        self_h = h[self_idx]                                  # [Nd, H]
        hn = h[nbr]                                           # mailbox [Nd, K, H]
        a1, a2 = a[0, :hidden], a[0, hidden:]
        e = _ref_dot(hn, a1) + _ref_dot(self_h, a2)[:, None]  # [Nd, K]
        e = jnp.where(e >= 0.0, e, 0.01 * e)                  # F.leaky_relu
        e = e - e.max(axis=1, keepdims=True)
        p = jnp.exp(e)
        alpha = p / p.sum(axis=1, keepdims=True)
        h_red = jnp.sum(alpha[:, :, None] * hn, axis=1)
        hcat = jnp.concatenate([self_h, h_red - self_h], axis=1)
        h = jax.nn.relu(_ref_dot(hcat, wg) + bg)              # NodeUpdate
    wo, bo = raw["fc"]
    return _ref_dot(h, wo) + bo


# ----------------------------- main -----------------------------

if __name__ == "__main__":
    in_dim, hidden_dim, num_class, num_layers = 16, 32, 8, 2
    K = 4                                   # fixed sampling fan-in
    layer_sizes = [64, 32, 16]              # |layer 0| > |layer 1| > |layer 2|

    key = jax.random.PRNGKey(0)
    key, kx = jax.random.split(key)
    node_features = jax.random.normal(kx, (layer_sizes[0], in_dim), jnp.float32)

    nbr_idx_list, self_idx_list = [], []
    for i in range(num_layers):
        key, kn = jax.random.split(key)
        nbr_idx_list.append(
            jax.random.randint(kn, (layer_sizes[i + 1], K), 0, layer_sizes[i],
                               dtype=jnp.int32))
        # layer i+1 nodes are (locally) the first N[i+1] nodes of layer i
        self_idx_list.append(jnp.arange(layer_sizes[i + 1], dtype=jnp.int32))

    raw = init_raw_params(key, in_dim, hidden_dim, num_class, num_layers)
    padded = pad_params(raw, hidden_dim, num_class)

    out = gat_train_forward(padded, node_features, nbr_idx_list, self_idx_list,
                            num_class)
    out = jax.block_until_ready(out)
    assert out.shape == (layer_sizes[-1], num_class)

    ref = jax.block_until_ready(
        reference_forward(raw, node_features, nbr_idx_list, self_idx_list))
    max_err = float(jnp.max(jnp.abs(out - ref)))
    assert jnp.allclose(out, ref, rtol=2e-2, atol=2e-2), f"max abs err = {max_err}"

    print("KERNEL_OK")
</pallas_src>

<mosaic_0001>
module attributes {stable_mosaic.version = 11 : i64} {
  func.func @_gat_network_kernel(%arg0: i32, %arg1: memref<64x128xf32, #tpu.memory_space<vmem>>, %arg2: memref<160x1xi32, #tpu.memory_space<vmem>>, %arg3: memref<80x1xi32, #tpu.memory_space<vmem>>, %arg4: memref<128x128xbf16, #tpu.memory_space<vmem>>, %arg5: memref<1x128xf32, #tpu.memory_space<vmem>>, %arg6: memref<128x128xbf16, #tpu.memory_space<vmem>>, %arg7: memref<128x128xbf16, #tpu.memory_space<vmem>>, %arg8: memref<1x128xf32, #tpu.memory_space<vmem>>, %arg9: memref<128x128xbf16, #tpu.memory_space<vmem>>, %arg10: memref<1x128xf32, #tpu.memory_space<vmem>>, %arg11: memref<128x128xbf16, #tpu.memory_space<vmem>>, %arg12: memref<128x128xbf16, #tpu.memory_space<vmem>>, %arg13: memref<1x128xf32, #tpu.memory_space<vmem>>, %arg14: memref<128x128xbf16, #tpu.memory_space<vmem>>, %arg15: memref<1x128xf32, #tpu.memory_space<vmem>>, %arg16: memref<16x128xf32, #tpu.memory_space<vmem>>, %arg17: memref<160x128xf32, #tpu.memory_space<vmem>>) attributes {dimension_semantics = [#tpu.dimension_semantics<arbitrary>], iteration_bounds = array<i64: 1>, scalar_prefetch = 0 : i64, scratch_operands = 1 : i64, tpu.core_type = #tpu.core_type<tc>, window_params = [{pipeline_mode = #tpu.pipeline_mode<synchronous>, transform_indices = @transform_0, window_bounds = array<i64: 64, 128>}, {pipeline_mode = #tpu.pipeline_mode<synchronous>, transform_indices = @transform_1, window_bounds = array<i64: 160, 1>}, {pipeline_mode = #tpu.pipeline_mode<synchronous>, transform_indices = @transform_2, window_bounds = array<i64: 80, 1>}, {pipeline_mode = #tpu.pipeline_mode<synchronous>, transform_indices = @transform_3, window_bounds = array<i64: 128, 128>}, {pipeline_mode = #tpu.pipeline_mode<synchronous>, transform_indices = @transform_4, window_bounds = array<i64: 1, 128>}, {pipeline_mode = #tpu.pipeline_mode<synchronous>, transform_indices = @transform_5, window_bounds = array<i64: 128, 128>}, {pipeline_mode = #tpu.pipeline_mode<synchronous>, transform_indices = @transform_6, window_bounds = array<i64: 128, 128>}, {pipeline_mode = #tpu.pipeline_mode<synchronous>, transform_indices = @transform_7, window_bounds = array<i64: 1, 128>}, {pipeline_mode = #tpu.pipeline_mode<synchronous>, transform_indices = @transform_8, window_bounds = array<i64: 128, 128>}, {pipeline_mode = #tpu.pipeline_mode<synchronous>, transform_indices = @transform_9, window_bounds = array<i64: 1, 128>}, {pipeline_mode = #tpu.pipeline_mode<synchronous>, transform_indices = @transform_10, window_bounds = array<i64: 128, 128>}, {pipeline_mode = #tpu.pipeline_mode<synchronous>, transform_indices = @transform_11, window_bounds = array<i64: 128, 128>}, {pipeline_mode = #tpu.pipeline_mode<synchronous>, transform_indices = @transform_12, window_bounds = array<i64: 1, 128>}, {pipeline_mode = #tpu.pipeline_mode<synchronous>, transform_indices = @transform_13, window_bounds = array<i64: 128, 128>}, {pipeline_mode = #tpu.pipeline_mode<synchronous>, transform_indices = @transform_14, window_bounds = array<i64: 1, 128>}, {pipeline_mode = #tpu.pipeline_mode<synchronous>, transform_indices = @transform_15, window_bounds = array<i64: 16, 128>}]} {
    %c0 = arith.constant 0 : index
    %c0_0 = arith.constant 0 : index
    %0 = vector.load %arg1[%c0, %c0_0] : memref<64x128xf32, #tpu.memory_space<vmem>>, vector<64x128xf32>
    %1 = arith.truncf %0 : vector<64x128xf32> to vector<64x128xbf16>
    %c0_1 = arith.constant 0 : index
    %c0_2 = arith.constant 0 : index
    %2 = vector.load %arg4[%c0_1, %c0_2] : memref<128x128xbf16, #tpu.memory_space<vmem>>, vector<128x128xbf16>
    %cst = arith.constant dense<0.000000e+00> : vector<64x128xf32>
    %3 = tpu.matmul %1, %2, %cst {dimension_numbers = #tpu.dot_dimension_numbers<[1], [0], [0], [1], [0, 0, 1, 1], [], []>} : vector<64x128xbf16>, vector<128x128xbf16>, vector<64x128xf32> -> vector<64x128xf32>
    %c0_3 = arith.constant 0 : index
    %c0_4 = arith.constant 0 : index
    %4 = vector.load %arg5[%c0_3, %c0_4] : memref<1x128xf32, #tpu.memory_space<vmem>>, vector<1x128xf32>
    %5 = vector.broadcast %4 : vector<1x128xf32> to vector<64x128xf32>
    %6 = arith.addf %3, %5 : vector<64x128xf32>
    %7 = arith.truncf %6 : vector<64x128xf32> to vector<64x128xbf16>
    %c0_5 = arith.constant 0 : index
    %c0_6 = arith.constant 0 : index
    %8 = vector.load %arg2[%c0_5, %c0_6] : memref<160x1xi32, #tpu.memory_space<vmem>>, vector<160x1xi32>
    %9 = tpu.iota {dimensions = array<i32: 1>} : vector<160x64xi32>
    %10 = vector.broadcast %8 : vector<160x1xi32> to vector<160x64xi32>
    %11 = arith.cmpi eq, %9, %10 : vector<160x64xi32>
    %cst_7 = arith.constant 1.000000e+00 : f32
    %cst_8 = arith.constant 0.000000e+00 : f32
    %12 = vector.broadcast %cst_7 : f32 to vector<160x64xf32>
    %13 = vector.broadcast %cst_8 : f32 to vector<160x64xf32>
    %14 = arith.select %11, %12, %13 : vector<160x64xi1>, vector<160x64xf32>
    %15 = arith.truncf %14 : vector<160x64xf32> to vector<160x64xbf16>
    %cst_9 = arith.constant dense<0.000000e+00> : vector<160x128xf32>
    %16 = tpu.matmul %15, %7, %cst_9 {dimension_numbers = #tpu.dot_dimension_numbers<[1], [0], [0], [1], [0, 0, 1, 1], [], []>} : vector<160x64xbf16>, vector<64x128xbf16>, vector<160x128xf32> -> vector<160x128xf32>
    %c0_10 = arith.constant 0 : index
    %c0_11 = arith.constant 0 : index
    %17 = vector.load %arg17[%c0_10, %c0_11] : memref<160x128xf32, #tpu.memory_space<vmem>>, vector<160x128xf32>
    tpu.vector_store %arg17[%c0_10, %c0_11], %16 {strides = array<i32>} : memref<160x128xf32, #tpu.memory_space<vmem>>, vector<160x128xf32>,
    %c0_12 = arith.constant 0 : index
    %c0_13 = arith.constant 0 : index
    %18 = vector.load %arg17[%c0_12, %c0_13] : memref<160x128xf32, #tpu.memory_space<vmem>>, vector<32x128xf32>
    %19 = vector.extract_strided_slice %18 {offsets = [0, 126], sizes = [32, 1], strides = [1, 1]} : vector<32x128xf32> to vector<32x1xf32>
    %cst_14 = arith.constant 0xFF800000 : f32
    %20 = vector.broadcast %cst_14 : f32 to vector<32x1xf32>
    %cst_15 = arith.constant 0.000000e+00 : f32
    %21 = vector.broadcast %cst_15 : f32 to vector<32x1xf32>
    %cst_16 = arith.constant 0.000000e+00 : f32
    %22 = vector.broadcast %cst_16 : f32 to vector<32x128xf32>
    %c32 = arith.constant 32 : index
    %c0_17 = arith.constant 0 : index
    %23 = vector.load %arg17[%c32, %c0_17] : memref<160x128xf32, #tpu.memory_space<vmem>>, vector<32x128xf32>
    %24 = vector.extract_strided_slice %23 {offsets = [0, 127], sizes = [32, 1], strides = [1, 1]} : vector<32x128xf32> to vector<32x1xf32>
    %25 = arith.addf %24, %19 : vector<32x1xf32>
    %cst_18 = arith.constant 0.000000e+00 : f32
    %26 = vector.broadcast %cst_18 : f32 to vector<32x1xf32>
    %27 = arith.cmpf oge, %25, %26 : vector<32x1xf32>
    %cst_19 = arith.constant 0.00999999977 : f32
    %28 = vector.broadcast %cst_19 : f32 to vector<32x1xf32>
    %29 = arith.mulf %28, %25 : vector<32x1xf32>
    %30 = arith.select %27, %25, %29 : vector<32x1xi1>, vector<32x1xf32>
    %31 = arith.maximumf %20, %30 : vector<32x1xf32>
    %32 = arith.subf %20, %31 : vector<32x1xf32>
    %33 = math.exp %32 : vector<32x1xf32>
    %34 = arith.subf %30, %31 : vector<32x1xf32>
    %35 = math.exp %34 : vector<32x1xf32>
    %36 = arith.mulf %33, %21 : vector<32x1xf32>
    %37 = arith.addf %36, %35 : vector<32x1xf32>
    %38 = vector.broadcast %33 : vector<32x1xf32> to vector<32x128xf32>
    %39 = arith.mulf %38, %22 : vector<32x128xf32>
    %40 = vector.broadcast %35 : vector<32x1xf32> to vector<32x128xf32>
    %41 = arith.mulf %40, %23 : vector<32x128xf32>
    %42 = arith.addf %39, %41 : vector<32x128xf32>
    %c64 = arith.constant 64 : index
    %c0_20 = arith.constant 0 : index
    %43 = vector.load %arg17[%c64, %c0_20] : memref<160x128xf32, #tpu.memory_space<vmem>>, vector<32x128xf32>
    %44 = vector.extract_strided_slice %43 {offsets = [0, 127], sizes = [32, 1], strides = [1, 1]} : vector<32x128xf32> to vector<32x1xf32>
    %45 = arith.addf %44, %19 : vector<32x1xf32>
    %cst_21 = arith.constant 0.000000e+00 : f32
    %46 = vector.broadcast %cst_21 : f32 to vector<32x1xf32>
    %47 = arith.cmpf oge, %45, %46 : vector<32x1xf32>
    %cst_22 = arith.constant 0.00999999977 : f32
    %48 = vector.broadcast %cst_22 : f32 to vector<32x1xf32>
    %49 = arith.mulf %48, %45 : vector<32x1xf32>
    %50 = arith.select %47, %45, %49 : vector<32x1xi1>, vector<32x1xf32>
    %51 = arith.maximumf %31, %50 : vector<32x1xf32>
    %52 = arith.subf %31, %51 : vector<32x1xf32>
    %53 = math.exp %52 : vector<32x1xf32>
    %54 = arith.subf %50, %51 : vector<32x1xf32>
    %55 = math.exp %54 : vector<32x1xf32>
    %56 = arith.mulf %53, %37 : vector<32x1xf32>
    %57 = arith.addf %56, %55 : vector<32x1xf32>
    %58 = vector.broadcast %53 : vector<32x1xf32> to vector<32x128xf32>
    %59 = arith.mulf %58, %42 : vector<32x128xf32>
    %60 = vector.broadcast %55 : vector<32x1xf32> to vector<32x128xf32>
    %61 = arith.mulf %60, %43 : vector<32x128xf32>
    %62 = arith.addf %59, %61 : vector<32x128xf32>
    %c96 = arith.constant 96 : index
    %c0_23 = arith.constant 0 : index
    %63 = vector.load %arg17[%c96, %c0_23] : memref<160x128xf32, #tpu.memory_space<vmem>>, vector<32x128xf32>
    %64 = vector.extract_strided_slice %63 {offsets = [0, 127], sizes = [32, 1], strides = [1, 1]} : vector<32x128xf32> to vector<32x1xf32>
    %65 = arith.addf %64, %19 : vector<32x1xf32>
    %cst_24 = arith.constant 0.000000e+00 : f32
    %66 = vector.broadcast %cst_24 : f32 to vector<32x1xf32>
    %67 = arith.cmpf oge, %65, %66 : vector<32x1xf32>
    %cst_25 = arith.constant 0.00999999977 : f32
    %68 = vector.broadcast %cst_25 : f32 to vector<32x1xf32>
    %69 = arith.mulf %68, %65 : vector<32x1xf32>
    %70 = arith.select %67, %65, %69 : vector<32x1xi1>, vector<32x1xf32>
    %71 = arith.maximumf %51, %70 : vector<32x1xf32>
    %72 = arith.subf %51, %71 : vector<32x1xf32>
    %73 = math.exp %72 : vector<32x1xf32>
    %74 = arith.subf %70, %71 : vector<32x1xf32>
    %75 = math.exp %74 : vector<32x1xf32>
    %76 = arith.mulf %73, %57 : vector<32x1xf32>
    %77 = arith.addf %76, %75 : vector<32x1xf32>
    %78 = vector.broadcast %73 : vector<32x1xf32> to vector<32x128xf32>
    %79 = arith.mulf %78, %62 : vector<32x128xf32>
    %80 = vector.broadcast %75 : vector<32x1xf32> to vector<32x128xf32>
    %81 = arith.mulf %80, %63 : vector<32x128xf32>
    %82 = arith.addf %79, %81 : vector<32x128xf32>
    %c128 = arith.constant 128 : index
    %c0_26 = arith.constant 0 : index
    %83 = vector.load %arg17[%c128, %c0_26] : memref<160x128xf32, #tpu.memory_space<vmem>>, vector<32x128xf32>
    %84 = vector.extract_strided_slice %83 {offsets = [0, 127], sizes = [32, 1], strides = [1, 1]} : vector<32x128xf32> to vector<32x1xf32>
    %85 = arith.addf %84, %19 : vector<32x1xf32>
    %cst_27 = arith.constant 0.000000e+00 : f32
    %86 = vector.broadcast %cst_27 : f32 to vector<32x1xf32>
    %87 = arith.cmpf oge, %85, %86 : vector<32x1xf32>
    %cst_28 = arith.constant 0.00999999977 : f32
    %88 = vector.broadcast %cst_28 : f32 to vector<32x1xf32>
    %89 = arith.mulf %88, %85 : vector<32x1xf32>
    %90 = arith.select %87, %85, %89 : vector<32x1xi1>, vector<32x1xf32>
    %91 = arith.maximumf %71, %90 : vector<32x1xf32>
    %92 = arith.subf %71, %91 : vector<32x1xf32>
    %93 = math.exp %92 : vector<32x1xf32>
    %94 = arith.subf %90, %91 : vector<32x1xf32>
    %95 = math.exp %94 : vector<32x1xf32>
    %96 = arith.mulf %93, %77 : vector<32x1xf32>
    %97 = arith.addf %96, %95 : vector<32x1xf32>
    %98 = vector.broadcast %93 : vector<32x1xf32> to vector<32x128xf32>
    %99 = arith.mulf %98, %82 : vector<32x128xf32>
    %100 = vector.broadcast %95 : vector<32x1xf32> to vector<32x128xf32>
    %101 = arith.mulf %100, %83 : vector<32x128xf32>
    %102 = arith.addf %99, %101 : vector<32x128xf32>
    %103 = tpu.reciprocal %97 {approx = true} : vector<32x1xf32> -> vector<32x1xf32>
    %104 = vector.broadcast %103 : vector<32x1xf32> to vector<32x128xf32>
    %105 = arith.mulf %102, %104 : vector<32x128xf32>
    %106 = arith.truncf %18 : vector<32x128xf32> to vector<32x128xbf16>
    %c0_29 = arith.constant 0 : index
    %c0_30 = arith.constant 0 : index
    %107 = vector.load %arg6[%c0_29, %c0_30] : memref<128x128xbf16, #tpu.memory_space<vmem>>, vector<128x128xbf16>
    %cst_31 = arith.constant dense<0.000000e+00> : vector<32x128xf32>
    %108 = tpu.matmul %106, %107, %cst_31 {dimension_numbers = #tpu.dot_dimension_numbers<[1], [0], [0], [1], [0, 0, 1, 1], [], []>} : vector<32x128xbf16>, vector<128x128xbf16>, vector<32x128xf32> -> vector<32x128xf32>
    %109 = arith.truncf %105 : vector<32x128xf32> to vector<32x128xbf16>
    %c0_32 = arith.constant 0 : index
    %c0_33 = arith.constant 0 : index
    %110 = vector.load %arg7[%c0_32, %c0_33] : memref<128x128xbf16, #tpu.memory_space<vmem>>, vector<128x128xbf16>
    %cst_34 = arith.constant dense<0.000000e+00> : vector<32x128xf32>
    %111 = tpu.matmul %109, %110, %cst_34 {dimension_numbers = #tpu.dot_dimension_numbers<[1], [0], [0], [1], [0, 0, 1, 1], [], []>} : vector<32x128xbf16>, vector<128x128xbf16>, vector<32x128xf32> -> vector<32x128xf32>
    %112 = arith.addf %108, %111 : vector<32x128xf32>
    %c0_35 = arith.constant 0 : index
    %c0_36 = arith.constant 0 : index
    %113 = vector.load %arg8[%c0_35, %c0_36] : memref<1x128xf32, #tpu.memory_space<vmem>>, vector<1x128xf32>
    %114 = vector.broadcast %113 : vector<1x128xf32> to vector<32x128xf32>
    %115 = arith.addf %112, %114 : vector<32x128xf32>
    %cst_37 = arith.constant 0.000000e+00 : f32
    %116 = vector.broadcast %cst_37 : f32 to vector<32x128xf32>
    %117 = arith.maximumf %115, %116 : vector<32x128xf32>
    %118 = arith.truncf %117 : vector<32x128xf32> to vector<32x128xbf16>
    %c0_38 = arith.constant 0 : index
    %c0_39 = arith.constant 0 : index
    %119 = vector.load %arg9[%c0_38, %c0_39] : memref<128x128xbf16, #tpu.memory_space<vmem>>, vector<128x128xbf16>
    %cst_40 = arith.constant dense<0.000000e+00> : vector<32x128xf32>
    %120 = tpu.matmul %118, %119, %cst_40 {dimension_numbers = #tpu.dot_dimension_numbers<[1], [0], [0], [1], [0, 0, 1, 1], [], []>} : vector<32x128xbf16>, vector<128x128xbf16>, vector<32x128xf32> -> vector<32x128xf32>
    %c0_41 = arith.constant 0 : index
    %c0_42 = arith.constant 0 : index
    %121 = vector.load %arg10[%c0_41, %c0_42] : memref<1x128xf32, #tpu.memory_space<vmem>>, vector<1x128xf32>
    %122 = vector.broadcast %121 : vector<1x128xf32> to vector<32x128xf32>
    %123 = arith.addf %120, %122 : vector<32x128xf32>
    %124 = arith.truncf %123 : vector<32x128xf32> to vector<32x128xbf16>
    %c0_43 = arith.constant 0 : index
    %c0_44 = arith.constant 0 : index
    %125 = vector.load %arg3[%c0_43, %c0_44] : memref<80x1xi32, #tpu.memory_space<vmem>>, vector<80x1xi32>
    %126 = tpu.iota {dimensions = array<i32: 1>} : vector<80x32xi32>
    %127 = vector.broadcast %125 : vector<80x1xi32> to vector<80x32xi32>
    %128 = arith.cmpi eq, %126, %127 : vector<80x32xi32>
    %cst_45 = arith.constant 1.000000e+00 : f32
    %cst_46 = arith.constant 0.000000e+00 : f32
    %129 = vector.broadcast %cst_45 : f32 to vector<80x32xf32>
    %130 = vector.broadcast %cst_46 : f32 to vector<80x32xf32>
    %131 = arith.select %128, %129, %130 : vector<80x32xi1>, vector<80x32xf32>
    %132 = arith.truncf %131 : vector<80x32xf32> to vector<80x32xbf16>
    %cst_47 = arith.constant dense<0.000000e+00> : vector<80x128xf32>
    %133 = tpu.matmul %132, %124, %cst_47 {dimension_numbers = #tpu.dot_dimension_numbers<[1], [0], [0], [1], [0, 0, 1, 1], [], []>} : vector<80x32xbf16>, vector<32x128xbf16>, vector<80x128xf32> -> vector<80x128xf32>
    %c0_48 = arith.constant 0 : index
    %c0_49 = arith.constant 0 : index
    %134 = vector.load %arg17[%c0_48, %c0_49] : memref<160x128xf32, #tpu.memory_space<vmem>>, vector<80x128xf32>
    tpu.vector_store %arg17[%c0_48, %c0_49], %133 {strides = array<i32>} : memref<160x128xf32, #tpu.memory_space<vmem>>, vector<80x128xf32>,
    %c0_50 = arith.constant 0 : index
    %c0_51 = arith.constant 0 : index
    %135 = vector.load %arg17[%c0_50, %c0_51] : memref<160x128xf32, #tpu.memory_space<vmem>>, vector<16x128xf32>
    %136 = vector.extract_strided_slice %135 {offsets = [0, 126], sizes = [16, 1], strides = [1, 1]} : vector<16x128xf32> to vector<16x1xf32>
    %cst_52 = arith.constant 0xFF800000 : f32
    %137 = vector.broadcast %cst_52 : f32 to vector<16x1xf32>
    %cst_53 = arith.constant 0.000000e+00 : f32
    %138 = vector.broadcast %cst_53 : f32 to vector<16x1xf32>
    %cst_54 = arith.constant 0.000000e+00 : f32
    %139 = vector.broadcast %cst_54 : f32 to vector<16x128xf32>
    %c16 = arith.constant 16 : index
    %c0_55 = arith.constant 0 : index
    %140 = vector.load %arg17[%c16, %c0_55] : memref<160x128xf32, #tpu.memory_space<vmem>>, vector<16x128xf32>
    %141 = vector.extract_strided_slice %140 {offsets = [0, 127], sizes = [16, 1], strides = [1, 1]} : vector<16x128xf32> to vector<16x1xf32>
    %142 = arith.addf %141, %136 : vector<16x1xf32>
    %cst_56 = arith.constant 0.000000e+00 : f32
    %143 = vector.broadcast %cst_56 : f32 to vector<16x1xf32>
    %144 = arith.cmpf oge, %142, %143 : vector<16x1xf32>
    %cst_57 = arith.constant 0.00999999977 : f32
    %145 = vector.broadcast %cst_57 : f32 to vector<16x1xf32>
    %146 = arith.mulf %145, %142 : vector<16x1xf32>
    %147 = arith.select %144, %142, %146 : vector<16x1xi1>, vector<16x1xf32>
    %148 = arith.maximumf %137, %147 : vector<16x1xf32>
    %149 = arith.subf %137, %148 : vector<16x1xf32>
    %150 = math.exp %149 : vector<16x1xf32>
    %151 = arith.subf %147, %148 : vector<16x1xf32>
    %152 = math.exp %151 : vector<16x1xf32>
    %153 = arith.mulf %150, %138 : vector<16x1xf32>
    %154 = arith.addf %153, %152 : vector<16x1xf32>
    %155 = vector.broadcast %150 : vector<16x1xf32> to vector<16x128xf32>
    %156 = arith.mulf %155, %139 : vector<16x128xf32>
    %157 = vector.broadcast %152 : vector<16x1xf32> to vector<16x128xf32>
    %158 = arith.mulf %157, %140 : vector<16x128xf32>
    %159 = arith.addf %156, %158 : vector<16x128xf32>
    %c32_58 = arith.constant 32 : index
    %c0_59 = arith.constant 0 : index
    %160 = vector.load %arg17[%c32_58, %c0_59] : memref<160x128xf32, #tpu.memory_space<vmem>>, vector<16x128xf32>
    %161 = vector.extract_strided_slice %160 {offsets = [0, 127], sizes = [16, 1], strides = [1, 1]} : vector<16x128xf32> to vector<16x1xf32>
    %162 = arith.addf %161, %136 : vector<16x1xf32>
    %cst_60 = arith.constant 0.000000e+00 : f32
    %163 = vector.broadcast %cst_60 : f32 to vector<16x1xf32>
    %164 = arith.cmpf oge, %162, %163 : vector<16x1xf32>
    %cst_61 = arith.constant 0.00999999977 : f32
    %165 = vector.broadcast %cst_61 : f32 to vector<16x1xf32>
    %166 = arith.mulf %165, %162 : vector<16x1xf32>
    %167 = arith.select %164, %162, %166 : vector<16x1xi1>, vector<16x1xf32>
    %168 = arith.maximumf %148, %167 : vector<16x1xf32>
    %169 = arith.subf %148, %168 : vector<16x1xf32>
    %170 = math.exp %169 : vector<16x1xf32>
    %171 = arith.subf %167, %168 : vector<16x1xf32>
    %172 = math.exp %171 : vector<16x1xf32>
    %173 = arith.mulf %170, %154 : vector<16x1xf32>
    %174 = arith.addf %173, %172 : vector<16x1xf32>
    %175 = vector.broadcast %170 : vector<16x1xf32> to vector<16x128xf32>
    %176 = arith.mulf %175, %159 : vector<16x128xf32>
    %177 = vector.broadcast %172 : vector<16x1xf32> to vector<16x128xf32>
    %178 = arith.mulf %177, %160 : vector<16x128xf32>
    %179 = arith.addf %176, %178 : vector<16x128xf32>
    %c48 = arith.constant 48 : index
    %c0_62 = arith.constant 0 : index
    %180 = vector.load %arg17[%c48, %c0_62] : memref<160x128xf32, #tpu.memory_space<vmem>>, vector<16x128xf32>
    %181 = vector.extract_strided_slice %180 {offsets = [0, 127], sizes = [16, 1], strides = [1, 1]} : vector<16x128xf32> to vector<16x1xf32>
    %182 = arith.addf %181, %136 : vector<16x1xf32>
    %cst_63 = arith.constant 0.000000e+00 : f32
    %183 = vector.broadcast %cst_63 : f32 to vector<16x1xf32>
    %184 = arith.cmpf oge, %182, %183 : vector<16x1xf32>
    %cst_64 = arith.constant 0.00999999977 : f32
    %185 = vector.broadcast %cst_64 : f32 to vector<16x1xf32>
    %186 = arith.mulf %185, %182 : vector<16x1xf32>
    %187 = arith.select %184, %182, %186 : vector<16x1xi1>, vector<16x1xf32>
    %188 = arith.maximumf %168, %187 : vector<16x1xf32>
    %189 = arith.subf %168, %188 : vector<16x1xf32>
    %190 = math.exp %189 : vector<16x1xf32>
    %191 = arith.subf %187, %188 : vector<16x1xf32>
    %192 = math.exp %191 : vector<16x1xf32>
    %193 = arith.mulf %190, %174 : vector<16x1xf32>
    %194 = arith.addf %193, %192 : vector<16x1xf32>
    %195 = vector.broadcast %190 : vector<16x1xf32> to vector<16x128xf32>
    %196 = arith.mulf %195, %179 : vector<16x128xf32>
    %197 = vector.broadcast %192 : vector<16x1xf32> to vector<16x128xf32>
    %198 = arith.mulf %197, %180 : vector<16x128xf32>
    %199 = arith.addf %196, %198 : vector<16x128xf32>
    %c64_65 = arith.constant 64 : index
    %c0_66 = arith.constant 0 : index
    %200 = vector.load %arg17[%c64_65, %c0_66] : memref<160x128xf32, #tpu.memory_space<vmem>>, vector<16x128xf32>
    %201 = vector.extract_strided_slice %200 {offsets = [0, 127], sizes = [16, 1], strides = [1, 1]} : vector<16x128xf32> to vector<16x1xf32>
    %202 = arith.addf %201, %136 : vector<16x1xf32>
    %cst_67 = arith.constant 0.000000e+00 : f32
    %203 = vector.broadcast %cst_67 : f32 to vector<16x1xf32>
    %204 = arith.cmpf oge, %202, %203 : vector<16x1xf32>
    %cst_68 = arith.constant 0.00999999977 : f32
    %205 = vector.broadcast %cst_68 : f32 to vector<16x1xf32>
    %206 = arith.mulf %205, %202 : vector<16x1xf32>
    %207 = arith.select %204, %202, %206 : vector<16x1xi1>, vector<16x1xf32>
    %208 = arith.maximumf %188, %207 : vector<16x1xf32>
    %209 = arith.subf %188, %208 : vector<16x1xf32>
    %210 = math.exp %209 : vector<16x1xf32>
    %211 = arith.subf %207, %208 : vector<16x1xf32>
    %212 = math.exp %211 : vector<16x1xf32>
    %213 = arith.mulf %210, %194 : vector<16x1xf32>
    %214 = arith.addf %213, %212 : vector<16x1xf32>
    %215 = vector.broadcast %210 : vector<16x1xf32> to vector<16x128xf32>
    %216 = arith.mulf %215, %199 : vector<16x128xf32>
    %217 = vector.broadcast %212 : vector<16x1xf32> to vector<16x128xf32>
    %218 = arith.mulf %217, %200 : vector<16x128xf32>
    %219 = arith.addf %216, %218 : vector<16x128xf32>
    %220 = tpu.reciprocal %214 {approx = true} : vector<16x1xf32> -> vector<16x1xf32>
    %221 = vector.broadcast %220 : vector<16x1xf32> to vector<16x128xf32>
    %222 = arith.mulf %219, %221 : vector<16x128xf32>
    %223 = arith.truncf %135 : vector<16x128xf32> to vector<16x128xbf16>
    %c0_69 = arith.constant 0 : index
    %c0_70 = arith.constant 0 : index
    %224 = vector.load %arg11[%c0_69, %c0_70] : memref<128x128xbf16, #tpu.memory_space<vmem>>, vector<128x128xbf16>
    %cst_71 = arith.constant dense<0.000000e+00> : vector<16x128xf32>
    %225 = tpu.matmul %223, %224, %cst_71 {dimension_numbers = #tpu.dot_dimension_numbers<[1], [0], [0], [1], [0, 0, 1, 1], [], []>} : vector<16x128xbf16>, vector<128x128xbf16>, vector<16x128xf32> -> vector<16x128xf32>
    %226 = arith.truncf %222 : vector<16x128xf32> to vector<16x128xbf16>
    %c0_72 = arith.constant 0 : index
    %c0_73 = arith.constant 0 : index
    %227 = vector.load %arg12[%c0_72, %c0_73] : memref<128x128xbf16, #tpu.memory_space<vmem>>, vector<128x128xbf16>
    %cst_74 = arith.constant dense<0.000000e+00> : vector<16x128xf32>
    %228 = tpu.matmul %226, %227, %cst_74 {dimension_numbers = #tpu.dot_dimension_numbers<[1], [0], [0], [1], [0, 0, 1, 1], [], []>} : vector<16x128xbf16>, vector<128x128xbf16>, vector<16x128xf32> -> vector<16x128xf32>
    %229 = arith.addf %225, %228 : vector<16x128xf32>
    %c0_75 = arith.constant 0 : index
    %c0_76 = arith.constant 0 : index
    %230 = vector.load %arg13[%c0_75, %c0_76] : memref<1x128xf32, #tpu.memory_space<vmem>>, vector<1x128xf32>
    %231 = vector.broadcast %230 : vector<1x128xf32> to vector<16x128xf32>
    %232 = arith.addf %229, %231 : vector<16x128xf32>
    %cst_77 = arith.constant 0.000000e+00 : f32
    %233 = vector.broadcast %cst_77 : f32 to vector<16x128xf32>
    %234 = arith.maximumf %232, %233 : vector<16x128xf32>
    %235 = arith.truncf %234 : vector<16x128xf32> to vector<16x128xbf16>
    %c0_78 = arith.constant 0 : index
    %c0_79 = arith.constant 0 : index
    %236 = vector.load %arg14[%c0_78, %c0_79] : memref<128x128xbf16, #tpu.memory_space<vmem>>, vector<128x128xbf16>
    %cst_80 = arith.constant dense<0.000000e+00> : vector<16x128xf32>
    %237 = tpu.matmul %235, %236, %cst_80 {dimension_numbers = #tpu.dot_dimension_numbers<[1], [0], [0], [1], [0, 0, 1, 1], [], []>} : vector<16x128xbf16>, vector<128x128xbf16>, vector<16x128xf32> -> vector<16x128xf32>
    %c0_81 = arith.constant 0 : index
    %c0_82 = arith.constant 0 : index
    %238 = vector.load %arg15[%c0_81, %c0_82] : memref<1x128xf32, #tpu.memory_space<vmem>>, vector<1x128xf32>
    %239 = vector.broadcast %238 : vector<1x128xf32> to vector<16x128xf32>
    %240 = arith.addf %237, %239 : vector<16x128xf32>
    %c0_83 = arith.constant 0 : index
    %c0_84 = arith.constant 0 : index
    %241 = vector.load %arg16[%c0_83, %c0_84] : memref<16x128xf32, #tpu.memory_space<vmem>>, vector<16x128xf32>
    tpu.vector_store %arg16[%c0_83, %c0_84], %240 {strides = array<i32>} : memref<16x128xf32, #tpu.memory_space<vmem>>, vector<16x128xf32>,
    return
  }
  func.func @transform_0(%arg0: i32) -> (i32, i32) {
    %c0_i32 = arith.constant 0 : i32
    %c0_i32_0 = arith.constant 0 : i32
    %c0_i32_1 = arith.constant 0 : i32
    return %c0_i32, %c0_i32_0 : i32, i32
  }
  func.func @transform_1(%arg0: i32) -> (i32, i32) {
    %c0_i32 = arith.constant 0 : i32
    %c0_i32_0 = arith.constant 0 : i32
    %c0_i32_1 = arith.constant 0 : i32
    return %c0_i32, %c0_i32_0 : i32, i32
  }
  func.func @transform_2(%arg0: i32) -> (i32, i32) {
    %c0_i32 = arith.constant 0 : i32
    %c0_i32_0 = arith.constant 0 : i32
    %c0_i32_1 = arith.constant 0 : i32
    return %c0_i32, %c0_i32_0 : i32, i32
  }
  func.func @transform_3(%arg0: i32) -> (i32, i32) {
    %c0_i32 = arith.constant 0 : i32
    %c0_i32_0 = arith.constant 0 : i32
    %c0_i32_1 = arith.constant 0 : i32
    return %c0_i32, %c0_i32_0 : i32, i32
  }
  func.func @transform_4(%arg0: i32) -> (i32, i32) {
    %c0_i32 = arith.constant 0 : i32
    %c0_i32_0 = arith.constant 0 : i32
    %c0_i32_1 = arith.constant 0 : i32
    return %c0_i32, %c0_i32_0 : i32, i32
  }
  func.func @transform_5(%arg0: i32) -> (i32, i32) {
    %c0_i32 = arith.constant 0 : i32
    %c0_i32_0 = arith.constant 0 : i32
    %c0_i32_1 = arith.constant 0 : i32
    return %c0_i32, %c0_i32_0 : i32, i32
  }
  func.func @transform_6(%arg0: i32) -> (i32, i32) {
    %c0_i32 = arith.constant 0 : i32
    %c0_i32_0 = arith.constant 0 : i32
    %c0_i32_1 = arith.constant 0 : i32
    return %c0_i32, %c0_i32_0 : i32, i32
  }
  func.func @transform_7(%arg0: i32) -> (i32, i32) {
    %c0_i32 = arith.constant 0 : i32
    %c0_i32_0 = arith.constant 0 : i32
    %c0_i32_1 = arith.constant 0 : i32
    return %c0_i32, %c0_i32_0 : i32, i32
  }
  func.func @transform_8(%arg0: i32) -> (i32, i32) {
    %c0_i32 = arith.constant 0 : i32
    %c0_i32_0 = arith.constant 0 : i32
    %c0_i32_1 = arith.constant 0 : i32
    return %c0_i32, %c0_i32_0 : i32, i32
  }
  func.func @transform_9(%arg0: i32) -> (i32, i32) {
    %c0_i32 = arith.constant 0 : i32
    %c0_i32_0 = arith.constant 0 : i32
    %c0_i32_1 = arith.constant 0 : i32
    return %c0_i32, %c0_i32_0 : i32, i32
  }
  func.func @transform_10(%arg0: i32) -> (i32, i32) {
    %c0_i32 = arith.constant 0 : i32
    %c0_i32_0 = arith.constant 0 : i32
    %c0_i32_1 = arith.constant 0 : i32
    return %c0_i32, %c0_i32_0 : i32, i32
  }
  func.func @transform_11(%arg0: i32) -> (i32, i32) {
    %c0_i32 = arith.constant 0 : i32
    %c0_i32_0 = arith.constant 0 : i32
    %c0_i32_1 = arith.constant 0 : i32
    return %c0_i32, %c0_i32_0 : i32, i32
  }
  func.func @transform_12(%arg0: i32) -> (i32, i32) {
    %c0_i32 = arith.constant 0 : i32
    %c0_i32_0 = arith.constant 0 : i32
    %c0_i32_1 = arith.constant 0 : i32
    return %c0_i32, %c0_i32_0 : i32, i32
  }
  func.func @transform_13(%arg0: i32) -> (i32, i32) {
    %c0_i32 = arith.constant 0 : i32
    %c0_i32_0 = arith.constant 0 : i32
    %c0_i32_1 = arith.constant 0 : i32
    return %c0_i32, %c0_i32_0 : i32, i32
  }
  func.func @transform_14(%arg0: i32) -> (i32, i32) {
    %c0_i32 = arith.constant 0 : i32
    %c0_i32_0 = arith.constant 0 : i32
    %c0_i32_1 = arith.constant 0 : i32
    return %c0_i32, %c0_i32_0 : i32, i32
  }
  func.func @transform_15(%arg0: i32) -> (i32, i32) {
    %c0_i32 = arith.constant 0 : i32
    %c0_i32_0 = arith.constant 0 : i32
    %c0_i32_1 = arith.constant 0 : i32
    return %c0_i32, %c0_i32_0 : i32, i32
  }
}

</mosaic_0001>

<bundles_post_ra>
// kernel: tpu_custom_call.1
= control target key start
LH: loop header
LB: loop body
LE: loop exit
PB: predicated region body
PF: predicated region fallthrough
CT: control target
= control target key end

     0   :  { %20 = vsyncpa [#allocation4], 0  ;;  %s3539_s0 = inlined_call_operand.vmem [shape: f32[64,128], index: 0, kind: input, shape index: {}]   ;;  %s3540_s1 = inlined_call_operand.vmem [shape: s32[160,1], index: 1, kind: input, shape index: {}]   ;;  %s3541_s2 = inlined_call_operand.vmem [shape: s32[80,1], index: 2, kind: input, shape index: {}]   ;;  %s3542_s3 = inlined_call_operand.vmem [shape: bf16[128,128], index: 3, kind: input, shape index: {}]   ;;  %s3543_s4 = inlined_call_operand.vmem [shape: f32[1,128], index: 4, kind: input, shape index: {}]   ;;  %s3544_s5 = inlined_call_operand.vmem [shape: bf16[128,128], index: 5, kind: input, shape index: {}]   ;;  %s3545_s6 = inlined_call_operand.hbm [shape: bf16[128,128], index: 6, kind: input, shape index: {}]   ;;  %s3546_s7 = inlined_call_operand.hbm [shape: f32[1,128], index: 7, kind: input, shape index: {}]   ;;  %s3547_s8 = inlined_call_operand.vmem [shape: bf16[128,128], index: 8, kind: input, shape index: {}]   ;;  %s3548_s9 = inlined_call_operand.hbm [shape: f32[1,128], index: 9, kind: input, shape index: {}]   ;;  %s3549_s10 = inlined_call_operand.hbm [shape: bf16[128,128], index: 10, kind: input, shape index: {}]   ;;  %s3550_s11 = inlined_call_operand.hbm [shape: bf16[128,128], index: 11, kind: input, shape index: {}]   ;;  %s3551_s12 = inlined_call_operand.vmem [shape: f32[1,128], index: 12, kind: input, shape index: {}]   ;;  %s3552_s13 = inlined_call_operand.hbm [shape: bf16[128,128], index: 13, kind: input, shape index: {}]   ;;  %s3553_s14 = inlined_call_operand.vmem [shape: f32[1,128], index: 14, kind: input, shape index: {}]   ;;  %s3554_s15 = inlined_call_operand.hbm [shape: f32[16,128], index: 15, kind: output, shape index: {}]  }
   0x1   :  { %21 = vsyncpa [#allocation7], 0 }
   0x2   :  { %22 = vsyncpa [#allocation10], 0 }
   0x3   :  { %23 = vsyncpa [#allocation13], 0 }
   0x4   :  { %24 = vsyncpa [#allocation5], 0  ;;  %s2883_s18 = smov [#allocation6]  }
   0x5   :  { %s55_s19 = sshll.u32 %s2883_s18, 4  ;;  %s56_s19 = int_to_ptr.vmem [resolvable:$true] %s55_s19 }
   0x6   :  { %s2741_s20 = scalar_lea.vmem %s56_s19, 16  ;;  %s2745_s21 = scalar_lea.vmem %s56_s19, 32 }
   0x7   :  { %p2742_p0 = scmp.ne.s32.totalorder %s56_s19, %s2741_s20  ;;  %p2746_p1 = scmp.lt.s32.totalorder %s56_s19, %s56_s19 }
   0x8   :  { %p2747_p2 = scmp.lt.s32.totalorder %s2745_s21, %s2741_s20 }
   0xa   :  { %p2748_p3 = por %p2747_p2, %p2746_p1 }
   0xc   :  { %p2749_p4 = pnand %p2748_p3, %p2742_p0 }
   0xe   :  { %2752 = shalt.err (!%p2749_p4)
}
   0xf   :  { %58 = dma.hbm_to_vmem [thread:$0]  %s3546_s7, 16, %s56_s19, [#allocation7]  }
  0x10   :  { %s2884_s24 = smov [#allocation9]   ;;  %s2885_s26 = smov [#allocation3]  }
  0x11   :  { %s76_s25 = sshll.u32 %s2884_s24, 4  ;;  %s42_s27 = sshll.u32 %s2885_s26, 4  ;;  %s77_s25 = int_to_ptr.vmem [resolvable:$true] %s76_s25  ;;  %s43_s27 = int_to_ptr.vmem [resolvable:$true] %s42_s27 }
  0x12   :  { %s2761_s28 = scalar_lea.vmem %s77_s25, 1024  ;;  %p2766_p6 = scmp.lt.s32.totalorder %s77_s25, %s77_s25 }
  0x13   :  { %p2762_p5 = scmp.ne.s32.totalorder %s77_s25, %s2761_s28  ;;  %p2767_p7 = scmp.lt.s32.totalorder %s2761_s28, %s2761_s28 }
  0x15   :  { %p2768_p8 = por %p2767_p7, %p2766_p6 }
  0x17   :  { %p2769_p9 = pnand %p2768_p8, %p2762_p5 }
  0x19   :  { %2772 = shalt.err (!%p2769_p9)
}
  0x1a   :  { %s2886_s29 = smov 64   ;;  %s2887_s30 = smov 4  }
  0x1b   :  { %82 = dma.hbm_to_vmem [thread:$0]  %s3549_s10, 1024, %s77_s25, [#allocation10], %s2886_s29, %s2886_s29, %s2887_s30  }
  0x1c   :  { %s2781_s7 = scalar_lea.vmem %s43_s27, 1024  ;;  %p2786_p11 = scmp.lt.s32.totalorder %s43_s27, %s43_s27 }
  0x1d   :  { %p2782_p10 = scmp.ne.s32.totalorder %s43_s27, %s2781_s7  ;;  %p2787_p12 = scmp.lt.s32.totalorder %s2781_s7, %s2781_s7 }
  0x1f   :  { %p2788_p13 = por %p2787_p12, %p2786_p11 }
  0x21   :  { %p2789_p0 = pnand %p2788_p13, %p2782_p10 }
  0x23   :  { %2792 = shalt.err (!%p2789_p0)
}
  0x24   :  { %48 = dma.hbm_to_vmem [thread:$0]  %s3545_s6, 1024, %s43_s27, [#allocation4], %s2886_s29, %s2886_s29, %s2887_s30  }
  0x25   :  { %s2888_s20 = smov [#allocation8]   ;;  %s2889_s22 = smov [#allocation11]  }
  0x26   :  { %s67_s21 = sshll.u32 %s2888_s20, 4  ;;  %s88_s10 = sshll.u32 %s2889_s22, 4  ;;  %s68_s21 = int_to_ptr.vmem [resolvable:$true] %s67_s21  ;;  %s89_s10 = int_to_ptr.vmem [resolvable:$true] %s88_s10 }
  0x27   :  { %s2801_s23 = scalar_lea.vmem %s68_s21, 16  ;;  %s2805_s24 = scalar_lea.vmem %s68_s21, 32 }
  0x28   :  { %p2802_p1 = scmp.ne.s32.totalorder %s68_s21, %s2801_s23  ;;  %p2806_p2 = scmp.lt.s32.totalorder %s68_s21, %s68_s21 }
  0x29   :  { %p2807_p3 = scmp.lt.s32.totalorder %s2805_s24, %s2801_s23 }
  0x2b   :  { %p2808_p4 = por %p2807_p3, %p2806_p2 }
  0x2d   :  { %p2809_p5 = pnand %p2808_p4, %p2802_p1 }
  0x2f   :  { %2812 = shalt.err (!%p2809_p5)
}
  0x30   :  { %70 = dma.hbm_to_vmem [thread:$0]  %s3548_s9, 16, %s68_s21, [#allocation7]  }
  0x31   :  { %s2821_s28 = scalar_lea.vmem %s89_s10, 1024  ;;  %p2826_p7 = scmp.lt.s32.totalorder %s89_s10, %s89_s10 }
  0x32   :  { %p2822_p6 = scmp.ne.s32.totalorder %s89_s10, %s2821_s28  ;;  %p2827_p8 = scmp.lt.s32.totalorder %s2821_s28, %s2821_s28 }
  0x34   :  { %p2828_p9 = por %p2827_p8, %p2826_p7 }
  0x36   :  { %p2829_p10 = pnand %p2828_p9, %p2822_p6 }
  0x38   :  { %2832 = shalt.err (!%p2829_p10)
}
  0x39   :  { %94 = dma.hbm_to_vmem [thread:$0]  %s3550_s11, 1024, %s89_s10, [#allocation10], %s2886_s29, %s2886_s29, %s2887_s30  }
  0x3a   :  { %s2890_s16 = smov [#allocation12]  }
  0x3b   :  { %s102_s17 = sshll.u32 %s2890_s16, 4  ;;  %s103_s17 = int_to_ptr.vmem [resolvable:$true] %s102_s17 }
  0x3c   :  { %s2841_s7 = scalar_lea.vmem %s103_s17, 1024  ;;  %p2846_p12 = scmp.lt.s32.totalorder %s103_s17, %s103_s17 }
  0x3d   :  { %p2842_p11 = scmp.ne.s32.totalorder %s103_s17, %s2841_s7  ;;  %p2847_p13 = scmp.lt.s32.totalorder %s2841_s7, %s2841_s7 }
  0x3f   :  { %p2848_p0 = por %p2847_p13, %p2846_p12 }
  0x41   :  { %p2849_p1 = pnand %p2848_p0, %p2842_p11 }
  0x43   :  { %2852 = shalt.err (!%p2849_p1)
}
  0x44   :  { %108 = dma.hbm_to_vmem [thread:$0]  %s3552_s13, 1024, %s103_s17, [#allocation13], %s2886_s29, %s2886_s29, %s2887_s30  }
  0x45   :  { %2873 = dma.done.wait [#allocation4], 1024  }
  0x46   :  { %2874 = vsyncadd [#allocation4], 4294966272 }
  0x47   :  { %2875 = dma.done.wait [#allocation7], 32  }
  0x48   :  { %2876 = vsyncadd [#allocation7], 4294967264 }
  0x49   :  { %2877 = dma.done.wait [#allocation10], 2048  }
  0x4a   :  { %2878 = vsyncadd [#allocation10], 4294965248 }
  0x4b   :  { %2879 = dma.done.wait [#allocation13], 1024  }
  0x4c   :  { %2880 = vsyncadd [#allocation13], 4294966272  ;;  %v2891_v0 = vmov 0   ;;  %v2569_v1 = vld [vmem:[%s3542_s3 + $0x38] sm:$0xff]   ;;  %v2570_v2 = vld [vmem:[%s3542_s3 + $0x30] sm:$0xff]   ;;  %v302_v41 = vlaneseq  ;;  %v2892_v44 = vmov 0.0  }
  0x4d   :  { %2562 = vset.pattern.permute.xlu1 %v2891_v0  ;;  %2561 = vset.pattern.permute.xlu0 %v2891_v0  ;;  %v2571_v3 = vld [vmem:[%s3542_s3 + $0x28] sm:$0xff]   ;;  %v2572_v4 = vld [vmem:[%s3542_s3 + $0x20] sm:$0xff]   ;;  %v284_v8 = vld [vmem:[%s3540_s1 + $0x10] sm:$0xff]  ;;  %vm414_vm2 = vcmask 523264   ;;  %s2893_s19 = smov 1   ;;  %s2896_s24 = smov [#allocation14]  }
  0x4e   :  { %2349 = vmatprep.subr.bf16.mxu0 %v2569_v1  ;;  %v130_v5 = vld [vmem:[%s3539_s0] sm:$0xff]  ;;  %v131_v6 = vld [vmem:[%s3539_s0 + $0x8] sm:$0xff]  ;;  %v2573_v10 = vld [vmem:[%s3542_s3 + $0x18] sm:$0xff]   ;;  %311 = vperm.xlu1 %2562, %v284_v8   ;;  %v3119_v42 = vand.u32 127, %v302_v41 }
  0x4f   :  { %2350 = vmatpush3.bf16.msra.mxu0 %v2569_v1  ;;  %v138_v7 = vpack.c.bf16 %v131_v6, %v130_v5  ;;  %v282_v9 = vld [vmem:[%s3540_s1] sm:$0xff]  ;;  %v285_v11 = vld [vmem:[%s3540_s1 + $0x18] sm:$0xff]  ;;  %v283_v12 = vld [vmem:[%s3540_s1 + $0x8] sm:$0xff] }
  0x50   :  { %2351 = vmatprep.subr.bf16.mxu0 %v2570_v2  ;;  %305 = vperm.xlu0 %2561, %v282_v9   ;;  %v2574_v13 = vld [vmem:[%s3542_s3 + $0x10] sm:$0xff]   ;;  %v287_v14 = vld [vmem:[%s3540_s1 + $0x28] sm:$0xff]  ;;  %v286_v15 = vld [vmem:[%s3540_s1 + $0x20] sm:$0xff] }
  0x51   :  { %2365 = vmatprep.mubr.bf16.mxu0 %v138_v7  ;;  %v2575_v16 = vld [vmem:[%s3542_s3 + $0x8] sm:$0xff]   ;;  %v289_v17 = vld [vmem:[%s3540_s1 + $0x38] sm:$0xff]  ;;  %v288_v18 = vld [vmem:[%s3540_s1 + $0x30] sm:$0xff] }
  0x52   :  { %314 = vperm.xlu1 %2562, %v285_v11   ;;  %v2576_v19 = vld [vmem:[%s3542_s3] sm:$0xff]   ;;  %v291_v20 = vld [vmem:[%s3540_s1 + $0x48] sm:$0xff]  ;;  %v132_v22 = vld [vmem:[%s3539_s0 + $0x10] sm:$0xff] }
  0x53   :  { %2352 = vmatpush3.bf16.msra.mxu0 %v2570_v2  ;;  %v290_v21 = vld [vmem:[%s3540_s1 + $0x40] sm:$0xff]  ;;  %v133_v23 = vld [vmem:[%s3539_s0 + $0x18] sm:$0xff]  ;;  %v135_v25 = vld [vmem:[%s3539_s0 + $0x28] sm:$0xff] }
  0x54   :  { %2353 = vmatprep.subr.bf16.mxu0 %v2571_v3  ;;  %308 = vperm.xlu0 %2561, %v283_v12   ;;  %v134_v24 = vld [vmem:[%s3539_s0 + $0x20] sm:$0xff]  ;;  %v293_v26 = vld [vmem:[%s3540_s1 + $0x58] sm:$0xff]  ;;  %v292_v27 = vld [vmem:[%s3540_s1 + $0x50] sm:$0xff]  ;;  %v139_v28 = vpack.c.bf16 %v133_v23, %v132_v22 }
  0x55   :  { %v140_v29 = vpack.c.bf16 %v135_v25, %v134_v24  ;;  %v295_v30 = vld [vmem:[%s3540_s1 + $0x68] sm:$0xff]  ;;  %v294_v31 = vld [vmem:[%s3540_s1 + $0x60] sm:$0xff]  ;;  %v136_v32 = vld [vmem:[%s3539_s0 + $0x30] sm:$0xff] }
  0x56   :  { %320 = vperm.xlu1 %2562, %v287_v14   ;;  %v137_v33 = vld [vmem:[%s3539_s0 + $0x38] sm:$0xff]  ;;  %v296_v35 = vld [vmem:[%s3540_s1 + $0x70] sm:$0xff]  ;;  %v299_v37 = vld [vmem:[%s3540_s1 + $0x88] sm:$0xff] }
  0x57   :  { %2354 = vmatpush3.bf16.msra.mxu0 %v2571_v3  ;;  %v297_v34 = vld [vmem:[%s3540_s1 + $0x78] sm:$0xff]  ;;  %v141_v36 = vpack.c.bf16 %v137_v33, %v136_v32  ;;  %v298_v38 = vld [vmem:[%s3540_s1 + $0x80] sm:$0xff]  ;;  %v300_v40 = vld [vmem:[%s3540_s1 + $0x90] sm:$0xff] }
  0x58   :  { %2355 = vmatprep.subr.bf16.mxu0 %v2572_v4  ;;  %317 = vperm.xlu0 %2561, %v286_v15   ;;  %v301_v39 = vld [vmem:[%s3540_s1 + $0x98] sm:$0xff]  ;;  %v2578_v50 = vld [vmem:[%s3544_s5 + $0x30] sm:$0xff]   ;;  %v2579_v51 = vld [vmem:[%s3544_s5 + $0x28] sm:$0xff]  }
  0x59   :  { %v2577_v49 = vld [vmem:[%s3544_s5 + $0x38] sm:$0xff]   ;;  %v2580_v52 = vld [vmem:[%s3544_s5 + $0x20] sm:$0xff]   ;;  %v2582_v54 = vld [vmem:[%s3544_s5 + $0x10] sm:$0xff]  }
  0x5a   :  { %326 = vperm.xlu1 %2562, %v289_v17   ;;  %v2581_v53 = vld [vmem:[%s3544_s5 + $0x18] sm:$0xff]   ;;  %v2183_v2 = vld [vmem:[%s3543_s4] ss:$0 sm:$0xff] }
  0x5b   :  { %2356 = vmatpush3.bf16.msra.mxu0 %v2572_v4 }
  0x5c   :  { %2357 = vmatprep.subr.bf16.mxu0 %v2573_v10  ;;  %323 = vperm.xlu0 %2561, %v288_v18  }
  0x5e   :  { %332 = vperm.xlu1 %2562, %v291_v20  }
  0x5f   :  { %2358 = vmatpush3.bf16.msra.mxu0 %v2573_v10 }
  0x60   :  { %2359 = vmatprep.subr.bf16.mxu0 %v2574_v13  ;;  %329 = vperm.xlu0 %2561, %v290_v21  }
  0x62   :  { %338 = vperm.xlu1 %2562, %v293_v26  }
  0x63   :  { %2360 = vmatpush3.bf16.msra.mxu0 %v2574_v13 }
  0x64   :  { %2361 = vmatprep.subr.bf16.mxu0 %v2575_v16  ;;  %335 = vperm.xlu0 %2561, %v292_v27  }
  0x66   :  { %344 = vperm.xlu1 %2562, %v295_v30  }
  0x67   :  { %2362 = vmatpush3.bf16.msra.mxu0 %v2575_v16 }
  0x68   :  { %2363 = vmatprep.subr.bf16.mxu0 %v2576_v19  ;;  %341 = vperm.xlu0 %2561, %v294_v31  }
  0x6a   :  { %350 = vperm.xlu1 %2562, %v297_v34  }
  0x6b   :  { %2364 = vmatpush3.bf16.msra.mxu0 %v2576_v19 }
  0x6c   :  { %347 = vperm.xlu0 %2561, %v296_v35   ;;  %2421 = vmatprep.subr.bf16.mxu0 %v2577_v49 }
  0x6e   :  { %2366 = vmatmul.mubr.bf16.vlgmr.msra.gmra.mxu0 %v139_v28  ;;  %356 = vperm.xlu1 %2562, %v299_v37  }
  0x6f   :  { %2369 = vmatprep.mubr.bf16.mxu0 %v140_v29  ;;  %2422 = vmatpush3.bf16.msra.mxu0 %v2577_v49 }
  0x70   :  { %353 = vperm.xlu0 %2561, %v298_v38   ;;  %2423 = vmatprep.subr.bf16.mxu0 %v2578_v50 }
  0x72   :  { %362 = vperm.xlu1 %2562, %v301_v39  }
  0x73   :  { %2424 = vmatpush3.bf16.msra.mxu0 %v2578_v50 }
  0x74   :  { %359 = vperm.xlu0 %2561, %v300_v40   ;;  %2425 = vmatprep.subr.bf16.mxu0 %v2579_v51 }
  0x76   :  { %2370 = vmatmul.mubr.bf16.gmra.mxu0 %v141_v36 }
  0x77   :  { %2426 = vmatpush3.bf16.msra.mxu0 %v2579_v51 }
  0x78   :  { %2427 = vmatprep.subr.bf16.mxu0 %v2580_v52 }
  0x7b   :  { %2428 = vmatpush3.bf16.msra.mxu0 %v2580_v52 }
  0x7c   :  { %2429 = vmatprep.subr.bf16.mxu0 %v2581_v53 }
  0x7f   :  { %2430 = vmatpush3.bf16.msra.mxu0 %v2581_v53 }
  0x80   :  { %2431 = vmatprep.subr.bf16.mxu0 %v2582_v54 }
  0x83   :  { %2432 = vmatpush3.bf16.msra.mxu0 %v2582_v54 }
  0xc9   :  { %v312_v55 = vpop.permute.xlu1 %311 }
  0xca   :  { %vm366_vm3 = vcmp.eq.s32.totalorder %v3119_v42, %v312_v55 }
  0xcb   :  { %v306_v43 = vpop.permute.xlu0 %305  ;;  %v386_v21 = vsel %vm366_vm3, 1.0, %v2892_v44 }
  0xcc   :  { %vm364_vm0 = vcmp.eq.s32.totalorder %v3119_v42, %v306_v43 }
  0xcd   :  { %v384_v45 = vsel %vm364_vm0, 1.0, %v2892_v44  ;;  %v315_v59 = vpop.permute.xlu1 %314 }
  0xce   :  { %vm367_vm4 = vcmp.eq.s32.totalorder %v3119_v42, %v315_v59 }
  0xcf   :  { %v309_v46 = vpop.permute.xlu0 %308  ;;  %v387_v22 = vsel %vm367_vm4, 1.0, %v2892_v44 }
  0xd0   :  { %vm365_vm1 = vcmp.eq.s32.totalorder %v3119_v42, %v309_v46  ;;  %v405_v27 = vpack.c.bf16 %v387_v22, %v386_v21 }
  0xd1   :  { %v385_v47 = vsel %vm365_vm1, 1.0, %v2892_v44  ;;  %v321_v63 = vpop.permute.xlu1 %320 }
  0xd2   :  { %v404_v48 = vpack.c.bf16 %v385_v47, %v384_v45  ;;  %vm369_vm5 = vcmp.eq.s32.totalorder %v3119_v42, %v321_v63 }
  0xd3   :  { %v318_v1 = vpop.permute.xlu0 %317  ;;  %v389_v23 = vsel %vm369_vm5, 1.0, %v2892_v44 }
  0xd4   :  { %2381 = vmatprep.mubr.msk.bf16.mxu1 %vm414_vm2, %v404_v48  ;;  %vm368_vm6 = vcmp.eq.s32.totalorder %v3119_v42, %v318_v1 }
  0xd5   :  { %v327_v12 = vpop.permute.xlu1 %326  ;;  %v388_v24 = vsel %vm368_vm6, 1.0, %v2892_v44 }
  0xd6   :  { %v406_v28 = vpack.c.bf16 %v389_v23, %v388_v24  ;;  %vm371_vm7 = vcmp.eq.s32.totalorder %v3119_v42, %v327_v12 }
  0xd7   :  { %v324_v13 = vpop.permute.xlu0 %323  ;;  %v391_v29 = vsel %vm371_vm7, 1.0, %v2892_v44 }
  0xd8   :  { %vm370_vm8 = vcmp.eq.s32.totalorder %v3119_v42, %v324_v13 }
  0xd9   :  { %v333_v18 = vpop.permute.xlu1 %332  ;;  %v390_v30 = vsel %vm370_vm8, 1.0, %v2892_v44 }
  0xda   :  { %vm373_vm9 = vcmp.eq.s32.totalorder %v3119_v42, %v333_v18  ;;  %v407_v35 = vpack.c.bf16 %v391_v29, %v390_v30 }
  0xdb   :  { %v330_v19 = vpop.permute.xlu0 %329  ;;  %v393_v33 = vsel %vm373_vm9, 1.0, %v2892_v44 }
  0xdc   :  { %vm372_vm10 = vcmp.eq.s32.totalorder %v3119_v42, %v330_v19 }
  0xdd   :  { %v339_v25 = vpop.permute.xlu1 %338  ;;  %v392_v34 = vsel %vm372_vm10, 1.0, %v2892_v44 }
  0xde   :  { %v408_v36 = vpack.c.bf16 %v393_v33, %v392_v34  ;;  %vm375_vm11 = vcmp.eq.s32.totalorder %v3119_v42, %v339_v25 }
  0xdf   :  { %v336_v26 = vpop.permute.xlu0 %335  ;;  %v395_v39 = vsel %vm375_vm11, 1.0, %v2892_v44 }
  0xe0   :  { %vm374_vm12 = vcmp.eq.s32.totalorder %v3119_v42, %v336_v26 }
  0xe1   :  { %v345_v31 = vpop.permute.xlu1 %344  ;;  %v394_v40 = vsel %vm374_vm12, 1.0, %v2892_v44 }
  0xe2   :  { %vm377_vm13 = vcmp.eq.s32.totalorder %v3119_v42, %v345_v31  ;;  %v409_v45 = vpack.c.bf16 %v395_v39, %v394_v40 }
  0xe3   :  { %v342_v32 = vpop.permute.xlu0 %341  ;;  %v397_v41 = vsel %vm377_vm13, 1.0, %v2892_v44 }
  0xe4   :  { %vm376_vm14 = vcmp.eq.s32.totalorder %v3119_v42, %v342_v32 }
  0xe5   :  { %v351_v37 = vpop.permute.xlu1 %350  ;;  %v396_v43 = vsel %vm376_vm14, 1.0, %v2892_v44 }
  0xe6   :  { %v410_v46 = vpack.c.bf16 %v397_v41, %v396_v43  ;;  %vm379_vm15 = vcmp.eq.s32.totalorder %v3119_v42, %v351_v37 }
  0xe7   :  { %v348_v38 = vpop.permute.xlu0 %347  ;;  %v399_v49 = vsel %vm379_vm15, 1.0, %v2892_v44 }
  0xe8   :  { %vm378_vm0 = vcmp.eq.s32.totalorder %v3119_v42, %v348_v38 }
  0xe9   :  { %v357_v47 = vpop.permute.xlu1 %356  ;;  %v398_v50 = vsel %vm378_vm0, 1.0, %v2892_v44 }
  0xea   :  { %vm381_vm1 = vcmp.eq.s32.totalorder %v3119_v42, %v357_v47  ;;  %v411_v55 = vpack.c.bf16 %v399_v49, %v398_v50 }
  0xeb   :  { %v354_v48 = vpop.permute.xlu0 %353  ;;  %v401_v51 = vsel %vm381_vm1, 1.0, %v2892_v44 }
  0xec   :  { %vm380_vm3 = vcmp.eq.s32.totalorder %v3119_v42, %v354_v48 }
  0xed   :  { %v400_v52 = vsel %vm380_vm3, 1.0, %v2892_v44  ;;  %v363_v53 = vpop.permute.xlu1 %362 }
  0xee   :  { %vm383_vm4 = vcmp.eq.s32.totalorder %v3119_v42, %v363_v53 }
  0xef   :  { %v360_v54 = vpop.permute.xlu0 %359 }
  0xf0   :  { %vm382_vm5 = vcmp.eq.s32.totalorder %v3119_v42, %v360_v54 }
 0x12e   :  { %v2367_v56 = vpop.f32.mrf.mxu0 }
 0x12f   :  { %v256_v14 = vadd.f32 %v2367_v56, %v2183_v2  ;;  %v412_v56 = vpack.c.bf16 %v401_v51, %v400_v52 }
 0x130   :  { %v247_v57 = vpop.f32.mrf.mxu0 }
 0x131   :  { %v248_v17 = vadd.f32 %v2183_v2, %v247_v57  ;;  %v403_v57 = vsel %vm383_vm4, 1.0, %v2892_v44 }
 0x132   :  { %v2368_v58 = vpop.f32.mrf.mxu0 }
 0x133   :  { %v259_v10 = vadd.f32 %v2368_v58, %v2183_v2  ;;  %v402_v58 = vsel %vm382_vm5, 1.0, %v2892_v44 }
 0x134   :  { %v250_v60 = vpop.f32.mrf.mxu0  ;;  %v413_v59 = vpack.c.bf16 %v403_v57, %v402_v58 }
 0x135   :  { %v279_v15 = vpack.c.bf16 %v259_v10, %v256_v14  ;;  %v251_v16 = vadd.f32 %v2183_v2, %v250_v60  ;;  %v2583_v60 = vld [vmem:[%s3544_s5 + $0x8] sm:$0xff]  }
 0x136   :  { %v2371_v61 = vpop.f32.mrf.mxu0  ;;  %2433 = vmatprep.subr.bf16.mxu0 %v2583_v60 }
 0x137   :  { %v272_v4 = vadd.f32 %v2371_v61, %v2183_v2  ;;  %v278_v20 = vpack.c.bf16 %v251_v16, %v248_v17  ;;  %2434 = vmatpush3.bf16.msra.mxu0 %v2583_v60  ;;  %v2584_v61 = vld [vmem:[%s3544_s5] sm:$0xff]  }
 0x138   :  { %v263_v62 = vpop.f32.mrf.mxu0  ;;  %2435 = vmatprep.subr.bf16.mxu0 %v2584_v61 }
 0x139   :  { %v264_v7 = vadd.f32 %v2183_v2, %v263_v62 }
 0x13a   :  { %v2372_v3 = vpop.f32.mrf.mxu0 }
 0x13b   :  { %v275_v5 = vadd.f32 %v2372_v3, %v2183_v2  ;;  %2436 = vmatpush3.bf16.msra.mxu0 %v2584_v61 }
 0x13c   :  { %v266_v6 = vpop.f32.mrf.mxu0  ;;  %2485 = vmatprep.subr.bf16.mxu0 %v2892_v44 }
 0x13d   :  { %v267_v8 = vadd.f32 %v2183_v2, %v266_v6  ;;  %v281_v9 = vpack.c.bf16 %v275_v5, %v272_v4  ;;  %v2894_v5 = vmov 127  }
 0x13e   :  { %2564 = vset.pattern.permute.xlu0 %v2894_v5  ;;  %2563 = vset.pattern.permute.xlu1 %v2894_v5 }
 0x13f   :  { %v280_v11 = vpack.c.bf16 %v267_v8, %v264_v7  ;;  %2373 = vmatprep.subr.bf16.mxu1 %v281_v9 }
 0x140   :  { %2374 = vmatpush3.bf16.msra.mxu1 %v281_v9 }
 0x141   :  { %2375 = vmatprep.subr.bf16.mxu1 %v280_v11 }
 0x144   :  { %2376 = vmatpush3.bf16.msra.mxu1 %v280_v11 }
 0x145   :  { %2377 = vmatprep.subr.bf16.mxu1 %v279_v15 }
 0x148   :  { %2378 = vmatpush3.bf16.msra.mxu1 %v279_v15 }
 0x149   :  { %2379 = vmatprep.subr.bf16.mxu1 %v278_v20 }
 0x14c   :  { %2380 = vmatpush3.bf16.msra.mxu1 %v278_v20 }
 0x14f   :  { %2382 = vmatmul.mubr.msk.bf16.vlgmr.msra.gmra.mxu1 %vm414_vm2, %v405_v27 }
 0x150   :  { %2385 = vmatprep.mubr.msk.bf16.mxu1 %vm414_vm2, %v406_v28 }
 0x157   :  { %2386 = vmatmul.mubr.msk.bf16.gmra.mxu1 %vm414_vm2, %v407_v35 }
 0x158   :  { %2389 = vmatprep.mubr.msk.bf16.mxu1 %vm414_vm2, %v408_v36 }
 0x15f   :  { %2390 = vmatmul.mubr.msk.bf16.gmra.mxu1 %vm414_vm2, %v409_v45 }
 0x160   :  { %2393 = vmatprep.mubr.msk.bf16.mxu1 %vm414_vm2, %v410_v46 }
 0x167   :  { %2394 = vmatmul.mubr.msk.bf16.gmra.mxu1 %vm414_vm2, %v411_v55 }
 0x168   :  { %2397 = vmatprep.mubr.msk.bf16.mxu1 %vm414_vm2, %v412_v56 }
 0x16f   :  { %2398 = vmatmul.mubr.msk.bf16.gmra.mxu1 %vm414_vm2, %v413_v59 }
 0x20f   :  { %v2383_v62 = vpop.f32.mrf.mxu1 }
 0x211   :  { %v479_v63 = vpop.f32.mrf.mxu1 }
 0x212   :  { %590 = vrot.lane.b32.xlu0 %v479_v63, %s2893_s19 }
 0x213   :  { %v2384_v1 = vpop.f32.mrf.mxu1 }
 0x214   :  { %v1055_v4 = vpack.c.bf16 %v2384_v1, %v2383_v62 }
 0x215   :  { %v482_v2 = vpop.f32.mrf.mxu1 }
 0x216   :  { %v1054_v3 = vpack.c.bf16 %v482_v2, %v479_v63  ;;  %594 = vrot.lane.b32.xlu0 %v2383_v62, %s2893_s19  ;;  %592 = vrot.lane.b32.xlu1 %v482_v2, %s2893_s19 }
 0x217   :  { %v3205_v6 = vpop.f32.mrf.mxu1 }
 0x218   :  { %2437 = vmatprep.mubr.bf16.mxu0 %v1054_v3 }
 0x219   :  { %2438 = vmatmul.mubr.bf16.vlgmr.msra.gmra.mxu0 %v1055_v4  ;;  %v3207_v7 = vpop.f32.mrf.mxu1 }
 0x21a   :  { %596 = vrot.lane.b32.xlu1 %v2384_v1, %s2893_s19 }
 0x21b   :  { %v3209_v8 = vpop.f32.mrf.mxu1 }
 0x21d   :  { %v3211_v9 = vpop.f32.mrf.mxu1 }
 0x21f   :  { %v3213_v10 = vpop.f32.mrf.mxu1 }
 0x221   :  { %v3215_v11 = vpop.f32.mrf.mxu1 }
 0x223   :  { %v3221_v15 = vpop.f32.mrf.mxu1 }
 0x225   :  { %v3229_v22 = vpop.f32.mrf.mxu1 }
 0x227   :  { %v3231_v27 = vpop.f32.mrf.mxu1 }
 0x229   :  { %v3235_v35 = vpop.f32.mrf.mxu1 }
 0x22b   :  { %v3237_v39 = vpop.f32.mrf.mxu1 }
 0x22d   :  { %v3247_v49 = vpop.f32.mrf.mxu1 }
 0x22f   :  { %v3255_v55 = vpop.f32.mrf.mxu1 }
 0x231   :  { %v3269_v2 = vpop.f32.mrf.mxu1 }
 0x284   :  { %v3217_v12 = vpop.permute.xlu0 %590 }
 0x285   :  { %v602_v13 = vadd.f32 %v3217_v12, %v3207_v7  ;;  %v706_v28 = vadd.f32 %v3217_v12, %v3215_v11  ;;  %v814_v51 = vadd.f32 %v3217_v12, %v3235_v35  ;;  %v922_v4 = vadd.f32 %v3217_v12, %v3269_v2 }
 0x287   :  { %vm606_vm2 = vcmp.ge.f32.partialorder %v602_v13, 0.0  ;;  %v610_v14 = vmul.f32 0.01, %v602_v13  ;;  %v714_v36 = vmul.f32 0.01, %v706_v28  ;;  %vm710_vm8 = vcmp.ge.f32.partialorder %v706_v28, 0.0 }
 0x288   :  { %v3223_v16 = vpop.permute.xlu0 %594  ;;  %v3241_v43 = vpop.permute.xlu1 %592  ;;  %vm818_vm10 = vcmp.ge.f32.partialorder %v814_v51, 0.0  ;;  %v822_v59 = vmul.f32 0.01, %v814_v51  ;;  %vm926_vm14 = vcmp.ge.f32.partialorder %v922_v4, 0.0 }
 0x289   :  { %v614_v17 = vsel %vm606_vm2, %v602_v13, %v610_v14  ;;  %v604_v18 = vadd.f32 %v3205_v6, %v3223_v16  ;;  %v708_v19 = vadd.f32 %v3213_v10, %v3223_v16  ;;  %v718_v40 = vsel %vm710_vm8, %v706_v28, %v714_v36 }
 0x28a   :  { %v618_v20 = vsub.f32 -inf, %v614_v17  ;;  %v630_v32 = vsub.f32 %v614_v17, %v614_v17  ;;  %v816_v41 = vadd.f32 %v3231_v27, %v3223_v16  ;;  %v3245_v46 = vmax.f32 %v614_v17, %v718_v40 }
 0x28b   :  { %vm608_vm6 = vcmp.ge.f32.partialorder %v604_v18, 0.0  ;;  %v612_v21 = vmul.f32 0.01, %v604_v18  ;;  %vm712_vm7 = vcmp.ge.f32.partialorder %v708_v19, 0.0  ;;  %v716_v25 = vmul.f32 0.01, %v708_v19 }
 0x28c   :  { %v622_v23 = vmul.f32 1.442695, %v618_v20  ;;  %v634_v37 = vmul.f32 1.442695, %v630_v32  ;;  %v824_v50 = vmul.f32 0.01, %v816_v41  ;;  %v726_v53 = vsub.f32 %v614_v17, %v3245_v46  ;;  %v3257_v56 = vpop.permute.xlu1 %596 }
 0x28d   :  { %v616_v24 = vsel %vm608_vm6, %v604_v18, %v612_v21  ;;  %v720_v31 = vsel %vm712_vm7, %v708_v19, %v716_v25  ;;  %vm820_vm9 = vcmp.ge.f32.partialorder %v816_v41, 0.0  ;;  %v738_v58 = vsub.f32 %v718_v40, %v3245_v46 }
 0x28e   :  { %2625 = vpow2.f32 %v622_v23  ;;  %v620_v26 = vsub.f32 -inf, %v616_v24  ;;  %v632_v30 = vsub.f32 %v616_v24, %v616_v24  ;;  %v724_v34 = vmax.f32 %v616_v24, %v720_v31 }
 0x28f   :  { %v828_v57 = vsel %vm820_vm9, %v816_v41, %v824_v50  ;;  %v730_v61 = vmul.f32 1.442695, %v726_v53  ;;  %v603_v62 = vadd.f32 %v3241_v43, %v3211_v9  ;;  %v605_v63 = vadd.f32 %v3209_v8, %v3257_v56 }
 0x290   :  { %v626_v29 = vmul.f32 1.442695, %v620_v26  ;;  %v638_v33 = vmul.f32 1.442695, %v632_v30  ;;  %v728_v38 = vsub.f32 %v616_v24, %v724_v34  ;;  %v740_v48 = vsub.f32 %v720_v31, %v724_v34 }
 0x291   :  { %v3261_v60 = vmax.f32 %v724_v34, %v828_v57  ;;  %v709_v3 = vadd.f32 %v3221_v15, %v3257_v56  ;;  %v826_v13 = vsel %vm818_vm10, %v814_v51, %v822_v59  ;;  %vm609_vm11 = vcmp.ge.f32.partialorder %v605_v63, 0.0 }
 0x292   :  { %2627 = vpow2.f32 %v626_v29  ;;  %v734_v47 = vmul.f32 1.442695, %v728_v38  ;;  %v746_v54 = vmul.f32 1.442695, %v740_v48  ;;  %v742_v17 = vmul.f32 1.442695, %v738_v58 }
 0x293   :  { %2629 = vpow2.f32 %v638_v33  ;;  %v836_v14 = vsub.f32 %v724_v34, %v3261_v60  ;;  %v611_v18 = vmul.f32 0.01, %v603_v62  ;;  %v613_v19 = vmul.f32 0.01, %v605_v63 }
 0x294   :  { %2631 = vpow2.f32 %v634_v37  ;;  %v830_v21 = vmax.f32 %v3245_v46, %v826_v13  ;;  %vm607_vm12 = vcmp.ge.f32.partialorder %v603_v62, 0.0  ;;  %v717_v23 = vmul.f32 0.01, %v709_v3 }
 0x295   :  { %2633 = vpow2.f32 %v734_v47  ;;  %v930_v24 = vmul.f32 0.01, %v922_v4  ;;  %v617_v25 = vsel %vm609_vm11, %v605_v63, %v613_v19  ;;  %vm713_vm13 = vcmp.ge.f32.partialorder %v709_v3, 0.0 }
 0x296   :  { %2635 = vpow2.f32 %v746_v54  ;;  %v842_v12 = vmul.f32 1.442695, %v836_v14  ;;  %v848_v26 = vsub.f32 %v828_v57, %v3261_v60  ;;  %v621_v28 = vsub.f32 -inf, %v617_v25 }
 0x297   :  { %2637 = vpow2.f32 %v730_v61  ;;  %v3279_v29 = vsel %vm607_vm12, %v603_v62, %v611_v18  ;;  %v707_v30 = vadd.f32 %v3241_v43, %v3229_v22  ;;  %v633_v31 = vsub.f32 %v617_v25, %v617_v25 }
 0x298   :  { %2639 = vpow2.f32 %v742_v17  ;;  %v834_v33 = vsub.f32 %v3245_v46, %v830_v21  ;;  %v924_v34 = vadd.f32 %v3255_v55, %v3223_v16  ;;  %v628_v36 = vmul.f32 1.442695, %v621_v28 }
 0x299   :  { %v721_v37 = vsel %vm713_vm13, %v709_v3, %v717_v23  ;;  %v846_v38 = vsub.f32 %v826_v13, %v830_v21  ;;  %v934_v40 = vsel %vm926_vm14, %v922_v4, %v930_v24  ;;  %2641 = vpow2.f32 %v842_v12 }
 0x29a   :  { %v854_v41 = vmul.f32 1.442695, %v848_v26  ;;  %v619_v47 = vsub.f32 -inf, %v3279_v29  ;;  %v631_v48 = vsub.f32 %v3279_v29, %v3279_v29  ;;  %v715_v50 = vmul.f32 0.01, %v707_v30 }
 0x29b   :  { %v3243_v45 = vpop.eup %2625  ;;  %2643 = vpow2.f32 %v628_v36  ;;  %v640_v51 = vmul.f32 1.442695, %v633_v31  ;;  %v3292_v46 = vmax.f32 %v617_v25, %v721_v37  ;;  %v838_v16 = vmul.f32 1.442695, %v834_v33 }
 0x29c   :  { %652 = vperm.xlu0 %2564, %v3243_v45   ;;  %v938_v54 = vmax.f32 %v830_v21, %v934_v40  ;;  %v932_v57 = vmul.f32 0.01, %v924_v34  ;;  %vm711_vm15 = vcmp.ge.f32.partialorder %v707_v30, 0.0  ;;  %vm928_vm0 = vcmp.ge.f32.partialorder %v924_v34, 0.0 }
 0x29d   :  { %v642_v58 = vmul.f32 0.0, %v3243_v45  ;;  %2645 = vpow2.f32 %v854_v41  ;;  %v624_v59 = vmul.f32 1.442695, %v619_v47  ;;  %v636_v61 = vmul.f32 1.442695, %v631_v48 }
 0x29e   :  { %v3298_v62 = vsel %vm711_vm15, %v707_v30, %v715_v50  ;;  %2647 = vpow2.f32 %v640_v51  ;;  %v729_v63 = vsub.f32 %v617_v25, %v3292_v46  ;;  %v850_v4 = vmul.f32 1.442695, %v846_v38 }
 0x29f   :  { %v3252_v52 = vpop.eup %2627  ;;  %2649 = vpow2.f32 %v838_v16  ;;  %v942_v13 = vsub.f32 %v830_v21, %v938_v54  ;;  %v936_v14 = vsel %vm928_vm0, %v924_v34, %v932_v57  ;;  %v3304_v45 = vmax.f32 %v3279_v29, %v3298_v62  ;;  %v3315_v34 = vpop.f32.mrf.mxu1 }
 0x2a0   :  { %662 = vperm.xlu1 %2563, %v3252_v52   ;;  %v3267_v1 = vpop.eup %2629  ;;  %v940_v17 = vmax.f32 %v3261_v60, %v936_v14  ;;  %2651 = vpow2.f32 %v624_v59  ;;  %v817_v19 = vadd.f32 %v3237_v39, %v3257_v56  ;;  %v644_v23 = vmul.f32 0.0, %v3252_v52 }
 0x2a1   :  { %v2632_v20 = vpop.eup %2631  ;;  %2653 = vpow2.f32 %v636_v61  ;;  %v736_v24 = vmul.f32 1.442695, %v729_v63  ;;  %v741_v25 = vsub.f32 %v721_v37, %v3292_v46  ;;  %v946_v12 = vmul.f32 1.442695, %v942_v13  ;;  %v3323_v51 = vpop.f32.mrf.mxu1 }
 0x2a2   :  { %v3283_v32 = vpop.eup %2633  ;;  %v646_v18 = vadd.f32 %v2632_v20, %v642_v58  ;;  %2655 = vpow2.f32 %v850_v4  ;;  %v954_v26 = vsub.f32 %v934_v40, %v938_v54  ;;  %v944_v28 = vsub.f32 %v3261_v60, %v940_v17 }
 0x2a3   :  { %v3294_v53 = vpop.eup %2635  ;;  %v727_v31 = vsub.f32 %v3279_v29, %v3304_v45  ;;  %v825_v33 = vmul.f32 0.01, %v817_v19  ;;  %v648_v36 = vadd.f32 %v3267_v1, %v644_v23  ;;  %2657 = vpow2.f32 %v736_v24 }
 0x2a4   :  { %686 = vperm.xlu1 %2563, %v3267_v1   ;;  %v2638_v3 = vpop.eup %2637  ;;  %v748_v37 = vmul.f32 1.442695, %v741_v25  ;;  %vm821_vm1 = vcmp.ge.f32.partialorder %v817_v19, 0.0  ;;  %2659 = vpow2.f32 %v946_v12  ;;  %v958_v40 = vmul.f32 1.442695, %v954_v26 }
 0x2a5   :  { %v2640_v21 = vpop.eup %2639  ;;  %v750_v30 = vmul.f32 %v2638_v3, %v646_v18  ;;  %v950_v60 = vmul.f32 1.442695, %v944_v28  ;;  %v956_v47 = vsub.f32 %v936_v14, %v940_v17  ;;  %v739_v48 = vsub.f32 %v3298_v62, %v3304_v45 }
 0x2a6   :  { %v2642_v52 = vpop.eup %2641  ;;  %v829_v50 = vsel %vm821_vm1, %v817_v19, %v825_v33  ;;  %v752_v16 = vmul.f32 %v3283_v32, %v648_v36  ;;  %v732_v54 = vmul.f32 1.442695, %v727_v31  ;;  %2661 = vpow2.f32 %v748_v37 }
 0x2a7   :  { %v754_v29 = vadd.f32 %v2640_v21, %v750_v30  ;;  %v3327_v57 = vmax.f32 %v3292_v46, %v829_v50  ;;  %2663 = vpow2.f32 %v958_v40  ;;  %v923_v61 = vadd.f32 %v3241_v43, %v3323_v51 }
 0x2a8   :  { %676 = vperm.xlu1 %2563, %v2632_v20   ;;  %v815_v20 = vadd.f32 %v3241_v43, %v3247_v49  ;;  %v3318_v38 = vpop.eup %2643  ;;  %2665 = vpow2.f32 %v950_v60  ;;  %v962_v62 = vmul.f32 1.442695, %v956_v47  ;;  %v756_v13 = vadd.f32 %v3294_v53, %v752_v16 }
 0x2a9   :  { %667 = vperm.xlu0 %2564, %v3318_v38   ;;  %2667 = vpow2.f32 %v732_v54  ;;  %v744_v14 = vmul.f32 1.442695, %v739_v48  ;;  %v837_v17 = vsub.f32 %v3292_v46, %v3327_v57  ;;  %v931_v19 = vmul.f32 0.01, %v923_v61 }
 0x2aa   :  { %v823_v41 = vmul.f32 0.01, %v815_v20  ;;  %vm819_vm3 = vcmp.ge.f32.partialorder %v815_v20, 0.0  ;;  %v2646_v1 = vpop.eup %2645  ;;  %v925_v43 = vadd.f32 %v3315_v34, %v3257_v56  ;;  %2669 = vpow2.f32 %v962_v62 }
 0x2ab   :  { %v3329_v58 = vpop.eup %2647  ;;  %vm927_vm4 = vcmp.ge.f32.partialorder %v923_v61, 0.0  ;;  %2671 = vpow2.f32 %v744_v14  ;;  %v849_v12 = vsub.f32 %v829_v50, %v3327_v57  ;;  %vm2895_vm2 = vmmov 0  }
 0x2ac   :  { %770 = vperm.xlu1 %2563, %v3283_v32   ;;  %v827_v59 = vsel %vm819_vm3, %v815_v20, %v823_v41  ;;  %v2650_v63 = vpop.eup %2649  ;;  %v935_v46 = vsel %vm927_vm4, %v923_v61, %v931_v19  ;;  %v933_v20 = vmul.f32 0.01, %v925_v43  ;;  %vm929_vm5 = vcmp.ge.f32.partialorder %v925_v43, 0.0  ;;  %v2585_v19 = vld [vmem:[#allocation3 + $0x38] sm:$0xff]   ;;  %2501 = vmatprep.mubr.msk.bf16.mxu0 %vm2895_vm2, %v2892_v44 }
 0x2ad   :  { %691 = vperm.xlu0 %2564, %v3329_v58   ;;  %v858_v32 = vmul.f32 %v2650_v63, %v754_v29  ;;  %v2652_v4 = vpop.eup %2651  ;;  %v856_v37 = vmul.f32 1.442695, %v849_v12  ;;  %2401 = vmatprep.subr.bf16.mxu1 %v2585_v19  ;;  %vm1488_vm8 = vcmask 261120  }
 0x2ae   :  { %v2654_v18 = vpop.eup %2653  ;;  %v643_v36 = vmul.f32 0.0, %v2652_v4  ;;  %v937_v40 = vsel %vm929_vm5, %v925_v43, %v933_v20  ;;  %2402 = vmatpush3.bf16.msra.mxu1 %v2585_v19 }
 0x2af   :  { %v2656_v23 = vpop.eup %2655  ;;  %v941_v29 = vmax.f32 %v3327_v57, %v937_v40 }
 0x2b0   :  { %794 = vperm.xlu1 %2563, %v3294_v53   ;;  %v862_v25 = vadd.f32 %v2656_v23, %v858_v32  ;;  %v844_v53 = vmul.f32 1.442695, %v837_v17  ;;  %v2658_v26 = vpop.eup %2657  ;;  %v647_v54 = vadd.f32 %v2654_v18, %v643_v36 }
 0x2b1   :  { %681 = vperm.xlu0 %2564, %v2654_v18   ;;  %v2660_v28 = vpop.eup %2659  ;;  %v945_v62 = vsub.f32 %v3327_v57, %v941_v29 }
 0x2b2   :  { %2673 = vpow2.f32 %v844_v53 }
 0x2b3   :  { %v952_v18 = vmul.f32 1.442695, %v945_v62 }
 0x2b4   :  { %760 = vperm.xlu1 %2563, %v2638_v3   ;;  %v831_v3 = vmax.f32 %v3304_v45, %v827_v59 }
 0x2b5   :  { %775 = vperm.xlu0 %2564, %v2658_v26  }
 0x2b6   :  { %v835_v24 = vsub.f32 %v3304_v45, %v831_v3  ;;  %v847_v31 = vsub.f32 %v827_v59, %v831_v3  ;;  %v939_v56 = vmax.f32 %v831_v3, %v935_v46  ;;  %v966_v45 = vmul.f32 %v2660_v28, %v862_v25 }
 0x2b7   :  { %v645_v59 = vmul.f32 0.0, %v3318_v38  ;;  %v957_v38 = vsub.f32 %v937_v40, %v941_v29 }
 0x2b8   :  { %784 = vperm.xlu1 %2563, %v2640_v21   ;;  %v860_v21 = vmul.f32 %v2642_v52, %v756_v13  ;;  %v840_v30 = vmul.f32 1.442695, %v835_v24  ;;  %v852_v60 = vmul.f32 1.442695, %v847_v31  ;;  %v943_v47 = vsub.f32 %v831_v3, %v939_v56 }
 0x2b9   :  { %v955_v61 = vsub.f32 %v935_v46, %v939_v56  ;;  %v649_v13 = vadd.f32 %v3329_v58, %v645_v59  ;;  %v964_v24 = vmul.f32 1.442695, %v957_v38  ;;  %v2586_v58 = vld [vmem:[#allocation3 + $0x30] sm:$0xff]   ;;  %v2587_v46 = vld [vmem:[#allocation3 + $0x28] sm:$0xff]  }
 0x2ba   :  { %v864_v33 = vadd.f32 %v2646_v1, %v860_v21  ;;  %2675 = vpow2.f32 %v840_v30  ;;  %2403 = vmatprep.subr.bf16.mxu1 %v2586_v58 }
 0x2bb   :  { %2677 = vpow2.f32 %v856_v37  ;;  %v960_v17 = vmul.f32 1.442695, %v955_v61  ;;  %2404 = vmatpush3.bf16.msra.mxu1 %v2586_v58 }
 0x2bc   :  { %878 = vperm.xlu1 %2563, %v2642_v52   ;;  %v2662_v52 = vpop.eup %2661  ;;  %2679 = vpow2.f32 %v852_v60  ;;  %2405 = vmatprep.subr.bf16.mxu1 %v2587_v46  ;;  %v2589_v60 = vld [vmem:[#allocation3 + $0x18] sm:$0xff]  }
 0x2bd   :  { %v2664_v41 = vpop.eup %2663  ;;  %799 = vperm.xlu0 %2564, %v2662_v52  }
 0x2be   :  { %v2666_v48 = vpop.eup %2665  ;;  %v970_v50 = vadd.f32 %v2664_v41, %v966_v45 }
 0x2bf   :  { %v968_v16 = vmul.f32 %v2666_v48, %v864_v33  ;;  %2406 = vmatpush3.bf16.msra.mxu1 %v2587_v46 }
 0x2c0   :  { %902 = vperm.xlu1 %2563, %v2646_v1   ;;  %v2668_v1 = vpop.eup %2667  ;;  %2681 = vrcp.f32 %v970_v50  ;;  %v2591_v50 = vld [vmem:[#allocation3 + $0x8] sm:$0xff]  }
 0x2c1   :  { %765 = vperm.xlu0 %2564, %v2668_v1   ;;  %v2670_v3 = vpop.eup %2669 }
 0x2c2   :  { %v972_v32 = vadd.f32 %v2670_v3, %v968_v16  ;;  %v2672_v14 = vpop.eup %2671  ;;  %v2592_v16 = vld [vmem:[#allocation3] sm:$0xff]  }
 0x2c3   :  { %v2674_v57 = vpop.eup %2673 }
 0x2c4   :  { %657 = vperm.xlu1 %2563, %v2652_v4   ;;  %v751_v4 = vmul.f32 %v2668_v1, %v647_v54  ;;  %v3350_v1 = vld [vmem:[%s3547_s8 + $0x38] sm:$0xff]  }
 0x2c5   :  { %789 = vperm.xlu0 %2564, %v2672_v14  }
 0x2c6   :  { %v755_v43 = vadd.f32 %v2672_v14, %v751_v4 }
 0x2c7   :  { %v2676_v25 = vpop.eup %2675 }
 0x2c8   :  { %868 = vperm.xlu1 %2563, %v2650_v63   ;;  %v948_v63 = vmul.f32 1.442695, %v943_v47  ;;  %v859_v21 = vmul.f32 %v2676_v25, %v755_v43  ;;  %v2678_v12 = vpop.eup %2677 }
 0x2c9   :  { %883 = vperm.xlu0 %2564, %v2674_v57  }
 0x2ca   :  { %2683 = vpow2.f32 %v948_v63 }
 0x2cb   :  { %2685 = vrcp.f32 %v972_v32 }
 0x2cc   :  { %892 = vperm.xlu1 %2563, %v2656_v23   ;;  %v753_v23 = vmul.f32 %v2658_v26, %v649_v13  ;;  %2687 = vpow2.f32 %v960_v17  ;;  %v2680_v26 = vpop.eup %2679 }
 0x2cd   :  { %2689 = vpow2.f32 %v952_v18  ;;  %907 = vperm.xlu0 %2564, %v2678_v12   ;;  %v863_v20 = vadd.f32 %v2680_v26, %v859_v21  ;;  %v2682_v31 = vpop.eup %2681 }
 0x2ce   :  { %v757_v53 = vadd.f32 %v2662_v52, %v753_v23  ;;  %2691 = vpow2.f32 %v964_v24 }
 0x2d0   :  { %986 = vperm.xlu1 %2563, %v2666_v48   ;;  %v861_v30 = vmul.f32 %v2674_v57, %v757_v53  ;;  %v2590_v48 = vld [vmem:[#allocation3 + $0x10] sm:$0xff]  }
 0x2d1   :  { %873 = vperm.xlu0 %2564, %v2676_v25  }
 0x2d2   :  { %v865_v33 = vadd.f32 %v2678_v12, %v861_v30 }
 0x2d4   :  { %1010 = vperm.xlu1 %2563, %v2670_v3  }
 0x2d5   :  { %897 = vperm.xlu0 %2564, %v2680_v26  }
 0x2d7   :  { %v2684_v56 = vpop.eup %2683 }
 0x2d8   :  { %976 = vperm.xlu1 %2563, %v2660_v28   ;;  %v2588_v28 = vld [vmem:[#allocation3 + $0x20] sm:$0xff]   ;;  %v967_v45 = vmul.f32 %v2684_v56, %v863_v20  ;;  %v2686_v36 = vpop.eup %2685 }
 0x2d9   :  { %2407 = vmatprep.subr.bf16.mxu1 %v2588_v28  ;;  %v2688_v37 = vpop.eup %2687 }
 0x2da   :  { %2408 = vmatpush3.bf16.msra.mxu1 %v2588_v28  ;;  %v2690_v52 = vpop.eup %2689  ;;  %v971_v40 = vadd.f32 %v2688_v37, %v967_v45 }
 0x2db   :  { %991 = vperm.xlu0 %2564, %v2690_v52   ;;  %v2692_v47 = vpop.eup %2691  ;;  %2409 = vmatprep.subr.bf16.mxu1 %v2589_v60 }
 0x2dc   :  { %1000 = vperm.xlu1 %2563, %v2664_v41   ;;  %v969_v41 = vmul.f32 %v2690_v52, %v865_v33  ;;  %2693 = vrcp.f32 %v971_v40 }
 0x2de   :  { %v973_v29 = vadd.f32 %v2692_v47, %v969_v41  ;;  %2410 = vmatpush3.bf16.msra.mxu1 %v2589_v60 }
 0x2df   :  { %1015 = vperm.xlu0 %2564, %v2692_v47   ;;  %2411 = vmatprep.subr.bf16.mxu1 %v2590_v48 }
 0x2e0   :  { %1032 = vperm.xlu1 %2563, %v2682_v31   ;;  %2695 = vrcp.f32 %v973_v29 }
 0x2e2   :  { %2412 = vmatpush3.bf16.msra.mxu1 %v2590_v48 }
 0x2e3   :  { %981 = vperm.xlu0 %2564, %v2684_v56   ;;  %2413 = vmatprep.subr.bf16.mxu1 %v2591_v50 }
 0x2e4   :  { %1042 = vperm.xlu1 %2563, %v2686_v36  }
 0x2e6   :  { %2414 = vmatpush3.bf16.msra.mxu1 %v2591_v50 }
 0x2e7   :  { %1005 = vperm.xlu0 %2564, %v2688_v37   ;;  %2415 = vmatprep.subr.bf16.mxu1 %v2592_v16 }
 0x2e8   :  { %2565 = vset.pattern.permute.xlu1 %v2891_v0 }
 0x2e9   :  { %v2694_v54 = vpop.eup %2693 }
 0x2ea   :  { %2416 = vmatpush3.bf16.msra.mxu1 %v2592_v16 }
 0x2eb   :  { %1037 = vperm.xlu0 %2564, %v2694_v54   ;;  %2441 = vmatprep.subr.bf16.mxu1 %v3350_v1 }
 0x2ed   :  { %v2696_v59 = vpop.eup %2695 }
 0x2ef   :  { %1047 = vperm.xlu0 %2564, %v2696_v59  }
 0x2f3   :  { %2566 = vset.pattern.permute.xlu0 %v2891_v0 }
 0x317   :  { %v653_v13 = vpop.permute.xlu0 %652 }
 0x318   :  { %v670_v33 = vmul.f32 0.0, %v653_v13 }
 0x31b   :  { %v663_v61 = vpop.permute.xlu1 %662 }
 0x31c   :  { %v672_v48 = vmul.f32 0.0, %v663_v61 }
 0x31f   :  { %v687_v63 = vpop.permute.xlu1 %686 }
 0x320   :  { %v696_v41 = vmul.f32 %v3205_v6, %v687_v63 }
 0x322   :  { %v700_v59 = vadd.f32 %v696_v41, %v672_v48  ;;  %v2600_v41 = vld [vmem:[%s3547_s8] sm:$0xff]  }
 0x323   :  { %v677_v62 = vpop.permute.xlu1 %676  ;;  %v1427_v48 = vld [vmem:[%s3541_s2 + $0x20] sm:$0xff] }
 0x324   :  { %v668_v17 = vpop.permute.xlu0 %667  ;;  %v694_v28 = vmul.f32 %v677_v62, %v3207_v7 }
 0x325   :  { %v673_v54 = vmul.f32 0.0, %v668_v17 }
 0x326   :  { %v698_v37 = vadd.f32 %v694_v28, %v670_v33 }
 0x327   :  { %v771_v3 = vpop.permute.xlu1 %770 }
 0x328   :  { %v692_v38 = vpop.permute.xlu0 %691 }
 0x329   :  { %v697_v50 = vmul.f32 %v3209_v8, %v692_v38 }
 0x32b   :  { %v795_v32 = vpop.permute.xlu1 %794  ;;  %v701_v6 = vadd.f32 %v697_v50, %v673_v54  ;;  %v1426_v50 = vld [vmem:[%s3541_s2 + $0x18] sm:$0xff] }
 0x32c   :  { %v682_v43 = vpop.permute.xlu0 %681  ;;  %v804_v62 = vmul.f32 %v3213_v10, %v795_v32  ;;  %v1430_v54 = vld [vmem:[%s3541_s2 + $0x38] sm:$0xff] }
 0x32d   :  { %v695_v31 = vmul.f32 %v682_v43, %v3211_v9  ;;  %v780_v43 = vmul.f32 %v771_v3, %v700_v59  ;;  %v1432_v59 = vld [vmem:[%s3541_s2 + $0x48] sm:$0xff] }
 0x32f   :  { %v761_v4 = vpop.permute.xlu1 %760  ;;  %v808_v38 = vadd.f32 %v804_v62, %v780_v43  ;;  %v2439_v62 = vpop.f32.mrf.mxu0 }
 0x330   :  { %v776_v23 = vpop.permute.xlu0 %775  ;;  %v778_v47 = vmul.f32 %v761_v4, %v698_v37 }
 0x333   :  { %v785_v14 = vpop.permute.xlu1 %784 }
 0x334   :  { %v802_v52 = vmul.f32 %v785_v14, %v3215_v11 }
 0x336   :  { %v806_v9 = vadd.f32 %v802_v52, %v778_v47  ;;  %v1424_v47 = vld [vmem:[%s3541_s2 + $0x8] sm:$0xff] }
 0x337   :  { %v879_v18 = vpop.permute.xlu1 %878  ;;  %1437 = vperm.xlu0 %2566, %v1424_v47  }
 0x338   :  { %v800_v24 = vpop.permute.xlu0 %799  ;;  %v888_v10 = vmul.f32 %v879_v18, %v808_v38 }
 0x339   :  { %v805_v63 = vmul.f32 %v3221_v15, %v800_v24 }
 0x33b   :  { %v903_v19 = vpop.permute.xlu1 %902  ;;  %1446 = vperm.xlu0 %2566, %v1427_v48  }
 0x33c   :  { %v766_v25 = vpop.permute.xlu0 %765 }
 0x33f   :  { %v658_v57 = vpop.permute.xlu1 %657 }
 0x340   :  { %v790_v21 = vpop.permute.xlu0 %789  ;;  %v671_v26 = vmul.f32 0.0, %v658_v57  ;;  %v781_v57 = vmul.f32 %v776_v23, %v701_v6 }
 0x341   :  { %v803_v29 = vmul.f32 %v790_v21, %v3229_v22 }
 0x342   :  { %v699_v56 = vadd.f32 %v695_v31, %v671_v26  ;;  %v809_v21 = vadd.f32 %v805_v63, %v781_v57 }
 0x343   :  { %v869_v58 = vpop.permute.xlu1 %868 }
 0x344   :  { %v884_v53 = vpop.permute.xlu0 %883  ;;  %v779_v40 = vmul.f32 %v766_v25, %v699_v56  ;;  %v886_v14 = vmul.f32 %v869_v58, %v806_v9  ;;  %v1429_v9 = vld [vmem:[%s3541_s2 + $0x30] sm:$0xff] }
 0x345   :  { %v889_v26 = vmul.f32 %v884_v53, %v809_v21  ;;  %1452 = vperm.xlu0 %2566, %v1429_v9  }
 0x346   :  { %v807_v16 = vadd.f32 %v803_v29, %v779_v40  ;;  %v2599_v40 = vld [vmem:[%s3547_s8 + $0x8] sm:$0xff]   ;;  %v1425_v29 = vld [vmem:[%s3541_s2 + $0x10] sm:$0xff] }
 0x347   :  { %v893_v0 = vpop.permute.xlu1 %892 }
 0x348   :  { %v908_v46 = vpop.permute.xlu0 %907  ;;  %v910_v7 = vmul.f32 %v893_v0, %v3235_v35  ;;  %v912_v35 = vmul.f32 %v3231_v27, %v903_v19 }
 0x349   :  { %v913_v3 = vmul.f32 %v3237_v39, %v908_v46 }
 0x34a   :  { %v914_v61 = vadd.f32 %v910_v7, %v886_v14  ;;  %v916_v15 = vadd.f32 %v912_v35, %v888_v10  ;;  %v1431_v7 = vld [vmem:[%s3541_s2 + $0x40] sm:$0xff] }
 0x34b   :  { %v987_v12 = vpop.permute.xlu1 %986  ;;  %v917_v27 = vadd.f32 %v913_v3, %v889_v26  ;;  %1458 = vperm.xlu0 %2566, %v1431_v7  }
 0x34c   :  { %v874_v20 = vpop.permute.xlu0 %873  ;;  %v996_v31 = vmul.f32 %v987_v12, %v916_v15  ;;  %v2596_v12 = vld [vmem:[%s3547_s8 + $0x20] sm:$0xff]  }
 0x34d   :  { %v887_v4 = vmul.f32 %v874_v20, %v807_v16  ;;  %v1428_v16 = vld [vmem:[%s3541_s2 + $0x28] sm:$0xff] }
 0x34f   :  { %v1011_v30 = vpop.permute.xlu1 %1010  ;;  %2567 = vset.pattern.permute.xlu0 %v2894_v5 }
 0x350   :  { %v898_v45 = vpop.permute.xlu0 %897 }
 0x351   :  { %v911_v22 = vmul.f32 %v898_v45, %v3247_v49  ;;  %v1020_v49 = vmul.f32 %v3255_v55, %v1011_v30  ;;  %v2597_v30 = vld [vmem:[%s3547_s8 + $0x18] sm:$0xff]  }
 0x353   :  { %v977_v36 = vpop.permute.xlu1 %976  ;;  %v915_v58 = vadd.f32 %v911_v22, %v887_v4  ;;  %v1024_v46 = vadd.f32 %v1020_v49, %v996_v31  ;;  %v2218_v22 = vld [vmem:[#allocation6] ss:$0 sm:$0xff] }
 0x354   :  { %v994_v25 = vmul.f32 %v977_v36, %v914_v61 }
 0x356   :  { %v992_v60 = vpop.permute.xlu0 %991 }
 0x357   :  { %v1001_v11 = vpop.permute.xlu1 %1000  ;;  %v997_v45 = vmul.f32 %v992_v60, %v917_v27  ;;  %v1423_v60 = vld [vmem:[%s3541_s2] sm:$0xff] }
 0x358   :  { %v1018_v8 = vmul.f32 %v1001_v11, %v3269_v2  ;;  %1434 = vperm.xlu1 %2565, %v1423_v60   ;;  %v2605_v60 = vld [vmem:[#allocation9 + $0x18] sm:$0xff]  }
 0x35a   :  { %v1016_v13 = vpop.permute.xlu0 %1015  ;;  %v1022_v0 = vadd.f32 %v1018_v8, %v994_v25 }
 0x35b   :  { %v1033_v32 = vpop.permute.xlu1 %1032  ;;  %v1021_v19 = vmul.f32 %v3315_v34, %v1016_v13  ;;  %v2595_v34 = vld [vmem:[%s3547_s8 + $0x28] sm:$0xff]   ;;  %v1269_v13 = vpop.f32.mrf.mxu0 }
 0x35c   :  { %v1050_v23 = vmul.f32 %v1033_v32, %v1022_v0  ;;  %1440 = vperm.xlu1 %2565, %v1425_v29  }
 0x35d   :  { %v1025_v37 = vadd.f32 %v1021_v19, %v997_v45  ;;  %v2440_v14 = vpop.f32.mrf.mxu0 }
 0x35e   :  { %v982_v17 = vpop.permute.xlu0 %981 }
 0x35f   :  { %v995_v20 = vmul.f32 %v982_v17, %v915_v58  ;;  %v1043_v56 = vpop.permute.xlu1 %1042  ;;  %v1272_v8 = vpop.f32.mrf.mxu0 }
 0x360   :  { %v1052_v36 = vmul.f32 %v1043_v56, %v1024_v46  ;;  %1443 = vperm.xlu1 %2565, %v1426_v50   ;;  %v2606_v50 = vld [vmem:[#allocation9 + $0x10] sm:$0xff]  }
 0x362   :  { %v1006_v24 = vpop.permute.xlu0 %1005 }
 0x363   :  { %v1019_v2 = vmul.f32 %v1006_v24, %v3323_v51  ;;  %v2594_v51 = vld [vmem:[%s3547_s8 + $0x30] sm:$0xff]   ;;  %v2219_v24 = vld [vmem:[#allocation8] ss:$0 sm:$0xff] }
 0x364   :  { %1449 = vperm.xlu1 %2565, %v1428_v16  }
 0x365   :  { %v1023_v18 = vadd.f32 %v1019_v2, %v995_v20 }
 0x366   :  { %v1038_v28 = vpop.permute.xlu0 %1037 }
 0x367   :  { %v1051_v39 = vmul.f32 %v1038_v28, %v1023_v18 }
 0x368   :  { %1455 = vperm.xlu1 %2565, %v1430_v54  }
 0x369   :  { %v1072_v33 = vpack.c.bf16 %v1051_v39, %v1050_v23 }
 0x36a   :  { %v1048_v53 = vpop.permute.xlu0 %1047 }
 0x36b   :  { %v1053_v52 = vmul.f32 %v1048_v53, %v1025_v37  ;;  %2417 = vmatprep.mubr.bf16.mxu1 %v1072_v33  ;;  %v2602_v53 = vld [vmem:[#allocation9 + $0x30] sm:$0xff]  }
 0x36c   :  { %1461 = vperm.xlu1 %2565, %v1432_v59  }
 0x36d   :  { %v1073_v55 = vpack.c.bf16 %v1053_v52, %v1052_v36  ;;  %v2601_v36 = vld [vmem:[#allocation9 + $0x38] sm:$0xff]  }
 0x36f   :  { %2418 = vmatmul.mubr.bf16.vlgmr.msra.gmra.mxu1 %v1073_v55 }
 0x370   :  { %2442 = vmatpush3.bf16.msra.mxu1 %v3350_v1  ;;  %v2598_v1 = vld [vmem:[%s3547_s8 + $0x10] sm:$0xff]   ;;  %2568 = vset.pattern.permute.xlu1 %v2894_v5 }
 0x371   :  { %2443 = vmatprep.subr.bf16.mxu1 %v2594_v51 }
 0x374   :  { %2444 = vmatpush3.bf16.msra.mxu1 %v2594_v51  ;;  %v2603_v51 = vld [vmem:[#allocation9 + $0x28] sm:$0xff]  }
 0x375   :  { %2445 = vmatprep.subr.bf16.mxu1 %v2595_v34 }
 0x378   :  { %2446 = vmatpush3.bf16.msra.mxu1 %v2595_v34 }
 0x379   :  { %2447 = vmatprep.subr.bf16.mxu1 %v2596_v12 }
 0x37c   :  { %2448 = vmatpush3.bf16.msra.mxu1 %v2596_v12 }
 0x37d   :  { %2449 = vmatprep.subr.bf16.mxu1 %v2597_v30 }
 0x380   :  { %2450 = vmatpush3.bf16.msra.mxu1 %v2597_v30 }
 0x381   :  { %2451 = vmatprep.subr.bf16.mxu1 %v2598_v1 }
 0x384   :  { %2452 = vmatpush3.bf16.msra.mxu1 %v2598_v1  ;;  %v2604_v1 = vld [vmem:[#allocation9 + $0x20] sm:$0xff]  }
 0x385   :  { %2453 = vmatprep.subr.bf16.mxu1 %v2599_v40 }
 0x388   :  { %2454 = vmatpush3.bf16.msra.mxu1 %v2599_v40 }
 0x389   :  { %2455 = vmatprep.subr.bf16.mxu1 %v2600_v41 }
 0x38c   :  { %2456 = vmatpush3.bf16.msra.mxu1 %v2600_v41 }
 0x38d   :  { %2461 = vmatprep.subr.bf16.mxu1 %v2892_v44 }
 0x3b2   :  { %v1438_v31 = vpop.permute.xlu0 %1437 }
 0x3b3   :  { %vm1464_vm7 = vcmp.eq.s32.totalorder %v3119_v42, %v1438_v31 }
 0x3b4   :  { %v1474_v45 = vsel %vm1464_vm7, 1.0, %v2892_v44 }
 0x3b6   :  { %v1447_v30 = vpop.permute.xlu0 %1446 }
 0x3b7   :  { %vm1467_vm12 = vcmp.eq.s32.totalorder %v3119_v42, %v1447_v30 }
 0x3b8   :  { %v1477_v41 = vsel %vm1467_vm12, 1.0, %v2892_v44 }
 0x3c0   :  { %v1453_v48 = vpop.permute.xlu0 %1452 }
 0x3c1   :  { %vm1469_vm14 = vcmp.eq.s32.totalorder %v3119_v42, %v1453_v48 }
 0x3c2   :  { %v1479_v16 = vsel %vm1469_vm14, 1.0, %v2892_v44 }
 0x3c6   :  { %v1459_v54 = vpop.permute.xlu0 %1458 }
 0x3c7   :  { %vm1471_vm0 = vcmp.eq.s32.totalorder %v3119_v42, %v1459_v54 }
 0x3d3   :  { %v1435_v49 = vpop.permute.xlu1 %1434 }
 0x3d4   :  { %vm1463_vm6 = vcmp.eq.s32.totalorder %v3119_v42, %v1435_v49 }
 0x3d5   :  { %v1473_v28 = vsel %vm1463_vm6, 1.0, %v2892_v44 }
 0x3d6   :  { %v1483_v33 = vpack.c.bf16 %v1474_v45, %v1473_v28 }
 0x3d7   :  { %v1441_v56 = vpop.permute.xlu1 %1440 }
 0x3d8   :  { %vm1465_vm9 = vcmp.eq.s32.totalorder %v3119_v42, %v1441_v56 }
 0x3d9   :  { %v1475_v52 = vsel %vm1465_vm9, 1.0, %v2892_v44 }
 0x3db   :  { %v1444_v37 = vpop.permute.xlu1 %1443 }
 0x3dc   :  { %vm1466_vm10 = vcmp.eq.s32.totalorder %v3119_v42, %v1444_v37 }
 0x3dd   :  { %v1476_v55 = vsel %vm1466_vm10, 1.0, %v2892_v44 }
 0x3de   :  { %v1484_v34 = vpack.c.bf16 %v1476_v55, %v1475_v52 }
 0x3df   :  { %v1450_v12 = vpop.permute.xlu1 %1449 }
 0x3e0   :  { %vm1468_vm11 = vcmp.eq.s32.totalorder %v3119_v42, %v1450_v12 }
 0x3e1   :  { %v1478_v40 = vsel %vm1468_vm11, 1.0, %v2892_v44 }
 0x3e2   :  { %v1485_v47 = vpack.c.bf16 %v1478_v40, %v1477_v41 }
 0x3e3   :  { %v1456_v29 = vpop.permute.xlu1 %1455 }
 0x3e4   :  { %vm1470_vm13 = vcmp.eq.s32.totalorder %v3119_v42, %v1456_v29 }
 0x3e5   :  { %v1480_v9 = vsel %vm1470_vm13, 1.0, %v2892_v44 }
 0x3e6   :  { %v1486_v59 = vpack.c.bf16 %v1480_v9, %v1479_v16 }
 0x3e7   :  { %v1462_v7 = vpop.permute.xlu1 %1461 }
 0x3e8   :  { %vm1472_vm15 = vcmp.eq.s32.totalorder %v3119_v42, %v1462_v7  ;;  %v2608_v42 = vld [vmem:[#allocation9] sm:$0xff]  }
 0x42f   :  { %v2419_v11 = vpop.f32.mrf.mxu1 }
 0x430   :  { %v1278_v63 = vadd.f32 %v2439_v62, %v2419_v11  ;;  %v1482_v62 = vsel %vm1472_vm15, 1.0, %v2892_v44 }
 0x431   :  { %v1172_v43 = vpop.f32.mrf.mxu1 }
 0x432   :  { %v1270_v6 = vadd.f32 %v1269_v13, %v1172_v43  ;;  %v1293_v25 = vadd.f32 %v2218_v22, %v1278_v63  ;;  %v1481_v13 = vsel %vm1471_vm0, 1.0, %v2892_v44 }
 0x433   :  { %v2420_v4 = vpop.f32.mrf.mxu1  ;;  %v1487_v11 = vpack.c.bf16 %v1482_v62, %v1481_v13 }
 0x434   :  { %v1281_v61 = vadd.f32 %v2440_v14, %v2420_v4  ;;  %v1291_v35 = vadd.f32 %v2218_v22, %v1270_v6  ;;  %v1297_v3 = vmax.f32 %v1293_v25, 0.0  ;;  %v2607_v14 = vld [vmem:[#allocation9 + $0x8] sm:$0xff]  }
 0x435   :  { %v1175_v38 = vpop.f32.mrf.mxu1 }
 0x436   :  { %v1294_v17 = vadd.f32 %v2218_v22, %v1281_v61  ;;  %v1273_v57 = vadd.f32 %v1272_v8, %v1175_v38  ;;  %v1295_v21 = vmax.f32 %v1291_v35, 0.0 }
 0x438   :  { %v1292_v10 = vadd.f32 %v2218_v22, %v1273_v57  ;;  %v1298_v32 = vmax.f32 %v1294_v17, 0.0 }
 0x43a   :  { %v1296_v5 = vmax.f32 %v1292_v10, 0.0  ;;  %v1300_v0 = vpack.c.bf16 %v1298_v32, %v1297_v3 }
 0x43c   :  { %v1299_v58 = vpack.c.bf16 %v1296_v5, %v1295_v21 }
 0x43e   :  { %2457 = vmatprep.mubr.bf16.mxu1 %v1299_v58 }
 0x43f   :  { %2458 = vmatmul.mubr.bf16.vlgmr.msra.gmra.mxu1 %v1300_v0 }
 0x440   :  { %2465 = vmatprep.mubr.msk.bf16.mxu1 %vm2895_vm2, %v2892_v44 }
 0x4ff   :  { %v2459_v15 = vpop.f32.mrf.mxu1 }
 0x500   :  { %v1415_v2 = vadd.f32 %v2459_v15, %v2219_v24 }
 0x501   :  { %v1406_v26 = vpop.f32.mrf.mxu1 }
 0x502   :  { %v1407_v39 = vadd.f32 %v2219_v24, %v1406_v26 }
 0x503   :  { %v2460_v20 = vpop.f32.mrf.mxu1 }
 0x504   :  { %v1418_v27 = vadd.f32 %v2460_v20, %v2219_v24 }
 0x505   :  { %v1409_v19 = vpop.f32.mrf.mxu1 }
 0x506   :  { %v1422_v23 = vpack.c.bf16 %v1418_v27, %v1415_v2  ;;  %v1410_v18 = vadd.f32 %v2219_v24, %v1409_v19 }
 0x508   :  { %2462 = vmatpush3.bf16.msra.mxu1 %v1422_v23  ;;  %v1421_v46 = vpack.c.bf16 %v1410_v18, %v1407_v39 }
 0x509   :  { %2463 = vmatprep.subr.bf16.mxu1 %v2892_v44 }
 0x50c   :  { %2464 = vmatpush3.bf16.msra.mxu1 %v1421_v46 }
 0x50d   :  { %2505 = vmatprep.subr.bf16.mxu1 %v2892_v44 }
 0x50f   :  { %2466 = vmatmul.mubr.msk.bf16.vlgmr.msra.gmra.mxu1 %vm1488_vm8, %v1483_v33 }
 0x510   :  { %2469 = vmatprep.mubr.msk.bf16.mxu1 %vm2895_vm2, %v2892_v44  ;;  %2506 = vmatpush3.bf16.msra.mxu1 %v2601_v36 }
 0x511   :  { %2507 = vmatprep.subr.bf16.mxu1 %v2892_v44 }
 0x514   :  { %2508 = vmatpush3.bf16.msra.mxu1 %v2602_v53 }
 0x515   :  { %2509 = vmatprep.subr.bf16.mxu1 %v2892_v44 }
 0x517   :  { %2470 = vmatmul.mubr.msk.bf16.gmra.mxu1 %vm1488_vm8, %v1484_v34 }
 0x518   :  { %2473 = vmatprep.mubr.msk.bf16.mxu1 %vm2895_vm2, %v2892_v44  ;;  %2510 = vmatpush3.bf16.msra.mxu1 %v2603_v51 }
 0x519   :  { %2511 = vmatprep.subr.bf16.mxu1 %v2892_v44 }
 0x51c   :  { %2512 = vmatpush3.bf16.msra.mxu1 %v2604_v1 }
 0x51d   :  { %2513 = vmatprep.subr.bf16.mxu1 %v2892_v44 }
 0x51f   :  { %2474 = vmatmul.mubr.msk.bf16.gmra.mxu1 %vm1488_vm8, %v1485_v47 }
 0x520   :  { %2477 = vmatprep.mubr.msk.bf16.mxu1 %vm2895_vm2, %v2892_v44  ;;  %2514 = vmatpush3.bf16.msra.mxu1 %v2605_v60 }
 0x521   :  { %2515 = vmatprep.subr.bf16.mxu1 %v2892_v44 }
 0x524   :  { %2516 = vmatpush3.bf16.msra.mxu1 %v2606_v50 }
 0x525   :  { %2517 = vmatprep.subr.bf16.mxu1 %v2892_v44 }
 0x527   :  { %2478 = vmatmul.mubr.msk.bf16.gmra.mxu1 %vm1488_vm8, %v1486_v59 }
 0x528   :  { %2481 = vmatprep.mubr.msk.bf16.mxu1 %vm2895_vm2, %v2892_v44  ;;  %2518 = vmatpush3.bf16.msra.mxu1 %v2607_v14 }
 0x529   :  { %2519 = vmatprep.subr.bf16.mxu1 %v2892_v44 }
 0x52c   :  { %2520 = vmatpush3.bf16.msra.mxu1 %v2608_v42 }
 0x52f   :  { %2482 = vmatmul.mubr.msk.bf16.gmra.mxu1 %vm1488_vm8, %v1487_v11 }
 0x530   :  { %2521 = vmatprep.mubr.msk.bf16.mxu1 %vm2895_vm2, %v2892_v44 }
 0x5cf   :  { %v1538_v43 = vpop.f32.mrf.mxu1 }
 0x5d0   :  { %1593 = vrot.lane.b32.xlu0 %v1538_v43, %s2893_s19 }
 0x5d1   :  { %v2467_v6 = vpop.f32.mrf.mxu1 }
 0x5d3   :  { %v1541_v63 = vpop.f32.mrf.mxu1 }
 0x5d4   :  { %v1825_v4 = vpack.c.bf16 %v1541_v63, %v1538_v43  ;;  %1595 = vrot.lane.b32.xlu1 %v1541_v63, %s2893_s19 }
 0x5d5   :  { %v2468_v22 = vpop.f32.mrf.mxu1 }
 0x5d6   :  { %2522 = vmatmul.mubr.bf16.vlgmr.msra.gmra.mxu1 %v1825_v4 }
 0x5d7   :  { %v3475_v61 = vpop.f32.mrf.mxu1 }
 0x5d9   :  { %v2471_v8 = vpop.f32.mrf.mxu1 }
 0x5db   :  { %v3477_v38 = vpop.f32.mrf.mxu1 }
 0x5dd   :  { %v2472_v35 = vpop.f32.mrf.mxu1 }
 0x5df   :  { %v3479_v17 = vpop.f32.mrf.mxu1 }
 0x5e1   :  { %v2475_v57 = vpop.f32.mrf.mxu1 }
 0x5e3   :  { %v3481_v25 = vpop.f32.mrf.mxu1 }
 0x5e5   :  { %v2476_v10 = vpop.f32.mrf.mxu1 }
 0x5e7   :  { %v3483_v32 = vpop.f32.mrf.mxu1 }
 0x5e9   :  { %v2479_v21 = vpop.f32.mrf.mxu1 }
 0x5eb   :  { %v3485_v5 = vpop.f32.mrf.mxu1 }
 0x5ed   :  { %v2480_v3 = vpop.f32.mrf.mxu1 }
 0x5ef   :  { %v3487_v58 = vpop.f32.mrf.mxu1 }
 0x5f1   :  { %v2483_v0 = vpop.f32.mrf.mxu1 }
 0x5f3   :  { %v3489_v15 = vpop.f32.mrf.mxu1 }
 0x5f5   :  { %v2484_v24 = vpop.f32.mrf.mxu1 }
 0x642   :  { %v1594_v26 = vpop.permute.xlu0 %1593 }
 0x643   :  { %v1599_v49 = vadd.f32 %v1594_v26, %v3475_v61  ;;  %v1651_v20 = vadd.f32 %v1594_v26, %v3479_v17  ;;  %v1705_v2 = vadd.f32 %v1594_v26, %v3483_v32  ;;  %v1759_v31 = vadd.f32 %v1594_v26, %v3487_v58 }
 0x645   :  { %vm1601_vm1 = vcmp.ge.f32.partialorder %v1599_v49, 0.0  ;;  %v1603_v27 = vmul.f32 0.01, %v1599_v49  ;;  %vm1653_vm3 = vcmp.ge.f32.partialorder %v1651_v20, 0.0  ;;  %v1655_v19 = vmul.f32 0.01, %v1651_v20 }
 0x646   :  { %vm1707_vm4 = vcmp.ge.f32.partialorder %v1705_v2, 0.0  ;;  %v1709_v23 = vmul.f32 0.01, %v1705_v2  ;;  %vm1761_vm5 = vcmp.ge.f32.partialorder %v1759_v31, 0.0  ;;  %v1763_v18 = vmul.f32 0.01, %v1759_v31  ;;  %v1596_v28 = vpop.permute.xlu1 %1595 }
 0x647   :  { %v1605_v56 = vsel %vm1601_vm1, %v1599_v49, %v1603_v27  ;;  %v1657_v45 = vsel %vm1653_vm3, %v1651_v20, %v1655_v19  ;;  %v1600_v39 = vadd.f32 %v1596_v28, %v3477_v38  ;;  %v1652_v46 = vadd.f32 %v1596_v28, %v3481_v25 }
 0x648   :  { %v1607_v33 = vsub.f32 -inf, %v1605_v56  ;;  %v1613_v36 = vsub.f32 %v1605_v56, %v1605_v56  ;;  %v1659_v37 = vmax.f32 %v1605_v56, %v1657_v45  ;;  %v1711_v53 = vsel %vm1707_vm4, %v1705_v2, %v1709_v23 }
 0x649   :  { %v1765_v52 = vsel %vm1761_vm5, %v1759_v31, %v1763_v18  ;;  %vm1602_vm6 = vcmp.ge.f32.partialorder %v1600_v39, 0.0  ;;  %v1604_v55 = vmul.f32 0.01, %v1600_v39  ;;  %vm1654_vm7 = vcmp.ge.f32.partialorder %v1652_v46, 0.0 }
 0x64a   :  { %v1609_v51 = vmul.f32 1.442695, %v1607_v33  ;;  %v1615_v34 = vmul.f32 1.442695, %v1613_v36  ;;  %v1661_v12 = vsub.f32 %v1605_v56, %v1659_v37  ;;  %v1667_v30 = vsub.f32 %v1657_v45, %v1659_v37 }
 0x64b   :  { %v1713_v1 = vmax.f32 %v1659_v37, %v1711_v53  ;;  %v1606_v40 = vsel %vm1602_vm6, %v1600_v39, %v1604_v55  ;;  %v1656_v41 = vmul.f32 0.01, %v1652_v46  ;;  %v1706_v29 = vadd.f32 %v1596_v28, %v3485_v5 }
 0x64c   :  { %2697 = vpow2.f32 %v1609_v51  ;;  %v1663_v60 = vmul.f32 1.442695, %v1661_v12  ;;  %v1608_v47 = vsub.f32 -inf, %v1606_v40  ;;  %v1669_v48 = vmul.f32 1.442695, %v1667_v30  ;;  %v2610_v30 = vld [vmem:[#allocation11 + $0x30] sm:$0xff]  }
 0x64d   :  { %2699 = vpow2.f32 %v1615_v34  ;;  %v1715_v50 = vsub.f32 %v1659_v37, %v1713_v1  ;;  %v1767_v9 = vmax.f32 %v1713_v1, %v1765_v52  ;;  %v1721_v16 = vsub.f32 %v1711_v53, %v1713_v1 }
 0x64e   :  { %v1611_v7 = vmul.f32 1.442695, %v1608_v47  ;;  %v1614_v54 = vsub.f32 %v1606_v40, %v1606_v40  ;;  %v1658_v59 = vsel %vm1654_vm7, %v1652_v46, %v1656_v41  ;;  %2701 = vpow2.f32 %v1663_v60 }
 0x64f   :  { %v1717_v62 = vmul.f32 1.442695, %v1715_v50  ;;  %v1769_v13 = vsub.f32 %v1713_v1, %v1767_v9  ;;  %v1660_v11 = vmax.f32 %v1606_v40, %v1658_v59  ;;  %vm1708_vm8 = vcmp.ge.f32.partialorder %v1706_v29, 0.0 }
 0x650   :  { %2703 = vpow2.f32 %v1611_v7  ;;  %v1617_v14 = vmul.f32 1.442695, %v1614_v54  ;;  %v1710_v42 = vmul.f32 0.01, %v1706_v29  ;;  %v1723_v43 = vmul.f32 1.442695, %v1721_v16 }
 0x651   :  { %2705 = vpow2.f32 %v1669_v48  ;;  %v1775_v6 = vsub.f32 %v1765_v52, %v1767_v9  ;;  %v1662_v63 = vsub.f32 %v1606_v40, %v1660_v11  ;;  %v1668_v4 = vsub.f32 %v1658_v59, %v1660_v11  ;;  %v2609_v52 = vld [vmem:[#allocation11 + $0x38] sm:$0xff]   ;;  %v2611_v7 = vld [vmem:[#allocation11 + $0x28] sm:$0xff]  }
 0x652   :  { %v1712_v22 = vsel %vm1708_vm8, %v1706_v29, %v1710_v42  ;;  %v1760_v8 = vadd.f32 %v1596_v28, %v3489_v15  ;;  %2707 = vpow2.f32 %v1717_v62  ;;  %v1771_v35 = vmul.f32 1.442695, %v1769_v13  ;;  %2486 = vmatpush3.bf16.msra.mxu0 %v2609_v52 }
 0x653   :  { %v1665_v57 = vmul.f32 1.442695, %v1662_v63  ;;  %v1714_v10 = vmax.f32 %v1660_v11, %v1712_v22  ;;  %2709 = vpow2.f32 %v1617_v14  ;;  %v1671_v21 = vmul.f32 1.442695, %v1668_v4  ;;  %2487 = vmatprep.subr.bf16.mxu0 %v2892_v44  ;;  %v2612_v14 = vld [vmem:[#allocation11 + $0x20] sm:$0xff]   ;;  %v2613_v4 = vld [vmem:[#allocation11 + $0x18] sm:$0xff]  }
 0x654   :  { %vm1762_vm9 = vcmp.ge.f32.partialorder %v1760_v8, 0.0  ;;  %v1764_v3 = vmul.f32 0.01, %v1760_v8  ;;  %2711 = vpow2.f32 %v1723_v43  ;;  %v1777_v0 = vmul.f32 1.442695, %v1775_v6 }
 0x655   :  { %v1716_v24 = vsub.f32 %v1660_v11, %v1714_v10  ;;  %v1722_v26 = vsub.f32 %v1712_v22, %v1714_v10  ;;  %2713 = vpow2.f32 %v1665_v57  ;;  %v2614_v22 = vld [vmem:[#allocation11 + $0x10] sm:$0xff]   ;;  %v2616_v57 = vld [vmem:[#allocation11] sm:$0xff]  }
 0x656   :  { %v1766_v49 = vsel %vm1762_vm9, %v1760_v8, %v1764_v3  ;;  %2715 = vpow2.f32 %v1771_v35  ;;  %2488 = vmatpush3.bf16.msra.mxu0 %v2610_v30  ;;  %v2615_v8 = vld [vmem:[#allocation11 + $0x8] sm:$0xff]  }
 0x657   :  { %v1719_v20 = vmul.f32 1.442695, %v1716_v24  ;;  %v1768_v2 = vmax.f32 %v1714_v10, %v1766_v49  ;;  %2717 = vpow2.f32 %v1671_v21  ;;  %v1725_v27 = vmul.f32 1.442695, %v1722_v26  ;;  %2489 = vmatprep.subr.bf16.mxu0 %v2892_v44 }
 0x658   :  { %2719 = vpow2.f32 %v1777_v0 }
 0x659   :  { %v2698_v31 = vpop.eup %2697  ;;  %v1770_v18 = vsub.f32 %v1714_v10, %v1768_v2  ;;  %v1776_v28 = vsub.f32 %v1766_v49, %v1768_v2  ;;  %2721 = vpow2.f32 %v1719_v20 }
 0x65a   :  { %v2700_v19 = vpop.eup %2699  ;;  %v1619_v23 = vmul.f32 0.0, %v2698_v31  ;;  %1625 = vperm.xlu0 %2567, %v2698_v31   ;;  %2723 = vpow2.f32 %v1725_v27  ;;  %2490 = vmatpush3.bf16.msra.mxu0 %v2611_v7 }
 0x65b   :  { %1637 = vperm.xlu1 %2568, %v2700_v19   ;;  %v2702_v56 = vpop.eup %2701  ;;  %v1773_v39 = vmul.f32 1.442695, %v1770_v18  ;;  %v1779_v33 = vmul.f32 1.442695, %v1776_v28  ;;  %2491 = vmatprep.subr.bf16.mxu0 %v2892_v44 }
 0x65c   :  { %v1621_v45 = vadd.f32 %v2700_v19, %v1619_v23 }
 0x65d   :  { %v2704_v46 = vpop.eup %2703  ;;  %2725 = vpow2.f32 %v1773_v39 }
 0x65e   :  { %v2706_v36 = vpop.eup %2705  ;;  %v1673_v37 = vmul.f32 %v2702_v56, %v1621_v45  ;;  %v1620_v53 = vmul.f32 0.0, %v2704_v46  ;;  %2727 = vpow2.f32 %v1779_v33  ;;  %2492 = vmatpush3.bf16.msra.mxu0 %v2612_v14 }
 0x65f   :  { %1679 = vperm.xlu1 %2568, %v2702_v56   ;;  %v2708_v51 = vpop.eup %2707  ;;  %2493 = vmatprep.subr.bf16.mxu0 %v2892_v44 }
 0x660   :  { %v1675_v55 = vadd.f32 %v2706_v36, %v1673_v37  ;;  %v2710_v34 = vpop.eup %2709 }
 0x661   :  { %v2712_v1 = vpop.eup %2711  ;;  %v1622_v40 = vadd.f32 %v2710_v34, %v1620_v53  ;;  %1642 = vperm.xlu0 %2567, %v2710_v34  }
 0x662   :  { %v1727_v12 = vmul.f32 %v2708_v51, %v1675_v55  ;;  %v2714_v41 = vpop.eup %2713  ;;  %2494 = vmatpush3.bf16.msra.mxu0 %v2613_v4 }
 0x663   :  { %1691 = vperm.xlu1 %2568, %v2706_v36   ;;  %v2716_v47 = vpop.eup %2715  ;;  %v1674_v29 = vmul.f32 %v2714_v41, %v1622_v40  ;;  %2495 = vmatprep.subr.bf16.mxu0 %v2892_v44 }
 0x664   :  { %v1729_v60 = vadd.f32 %v2712_v1, %v1727_v12  ;;  %v2718_v48 = vpop.eup %2717 }
 0x665   :  { %v2720_v9 = vpop.eup %2719  ;;  %v1676_v16 = vadd.f32 %v2718_v48, %v1674_v29  ;;  %1684 = vperm.xlu0 %2567, %v2714_v41  }
 0x666   :  { %v1781_v50 = vmul.f32 %v2716_v47, %v1729_v60  ;;  %v2722_v54 = vpop.eup %2721  ;;  %2496 = vmatpush3.bf16.msra.mxu0 %v2614_v22 }
 0x667   :  { %1630 = vperm.xlu1 %2568, %v2704_v46   ;;  %v1728_v62 = vmul.f32 %v2722_v54, %v1676_v16  ;;  %v2724_v13 = vpop.eup %2723  ;;  %2497 = vmatprep.subr.bf16.mxu0 %v2892_v44 }
 0x668   :  { %v1783_v59 = vadd.f32 %v2720_v9, %v1781_v50 }
 0x669   :  { %v1730_v11 = vadd.f32 %v2724_v13, %v1728_v62  ;;  %1696 = vperm.xlu0 %2567, %v2718_v48  }
 0x66a   :  { %v2726_v42 = vpop.eup %2725  ;;  %2729 = vrcp.f32 %v1783_v59  ;;  %2498 = vmatpush3.bf16.msra.mxu0 %v2615_v8  ;;  %v2249_v8 = vld [vmem:[%s3551_s12] ss:$0 sm:$0xff]  ;;  %s2168_s12 = sshll.u32 %s2896_s24, 4  ;;  %s2169_s12 = int_to_ptr.vmem [resolvable:$true] %s2168_s12 }
 0x66b   :  { %1733 = vperm.xlu1 %2568, %v2708_v51   ;;  %v1782_v43 = vmul.f32 %v2726_v42, %v1730_v11  ;;  %v2728_v6 = vpop.eup %2727  ;;  %2499 = vmatprep.subr.bf16.mxu0 %v2892_v44  ;;  %v2617_v11 = vld [vmem:[#allocation12 + $0x38] sm:$0xff]   ;;  %s2853_s25 = scalar_lea.vmem %s2169_s12, 256  ;;  %p2858_p3 = scmp.lt.s32.totalorder %s2169_s12, %s2169_s12 }
 0x66c   :  { %p2854_p2 = scmp.ne.s32.totalorder %s2169_s12, %s2853_s25  ;;  %p2859_p4 = scmp.lt.s32.totalorder %s2853_s25, %s2853_s25 }
 0x66d   :  { %v1784_v63 = vadd.f32 %v2728_v6, %v1782_v43  ;;  %1738 = vperm.xlu0 %2567, %v2722_v54   ;;  %v2622_v43 = vld [vmem:[#allocation12 + $0x10] sm:$0xff]  }
 0x66e   :  { %2500 = vmatpush3.bf16.msra.mxu0 %v2616_v57  ;;  %p2860_p5 = por %p2859_p4, %p2858_p3 }
 0x66f   :  { %1745 = vperm.xlu1 %2568, %v2712_v1   ;;  %2731 = vrcp.f32 %v1784_v63  ;;  %2525 = vmatprep.subr.bf16.mxu0 %v2892_v44  ;;  %v2624_v63 = vld [vmem:[#allocation12] sm:$0xff]  }
 0x670   :  { %p2861_p6 = pnand %p2860_p5, %p2854_p2 }
 0x671   :  { %1750 = vperm.xlu0 %2567, %v2724_v13  }
 0x673   :  { %1787 = vperm.xlu1 %2568, %v2716_v47  }
 0x675   :  { %1792 = vperm.xlu0 %2567, %v2726_v42   ;;  %v2621_v42 = vld [vmem:[#allocation12 + $0x18] sm:$0xff]  }
 0x677   :  { %1799 = vperm.xlu1 %2568, %v2720_v9   ;;  %v2730_v35 = vpop.eup %2729 }
 0x679   :  { %1804 = vperm.xlu0 %2567, %v2728_v6   ;;  %v2623_v6 = vld [vmem:[#allocation12 + $0x8] sm:$0xff]  }
 0x67b   :  { %1815 = vperm.xlu1 %2568, %v2730_v35  }
 0x67c   :  { %v2732_v10 = vpop.eup %2731 }
 0x67d   :  { %1820 = vperm.xlu0 %2567, %v2732_v10  }
 0x696   :  { %v3507_v21 = vpop.f32.mrf.mxu1 }
 0x698   :  { %v2523_v3 = vpop.f32.mrf.mxu1 }
 0x69a   :  { %v3509_v0 = vpop.f32.mrf.mxu1 }
 0x69c   :  { %v2524_v24 = vpop.f32.mrf.mxu1 }
 0x6d5   :  { %v1626_v49 = vpop.permute.xlu0 %1625 }
 0x6d6   :  { %v1638_v26 = vpop.permute.xlu1 %1637  ;;  %v1633_v18 = vmul.f32 0.0, %v1626_v49 }
 0x6d7   :  { %v1645_v23 = vmul.f32 %v1638_v26, %v3475_v61 }
 0x6d9   :  { %v1647_v33 = vadd.f32 %v1645_v23, %v1633_v18 }
 0x6da   :  { %v1680_v20 = vpop.permute.xlu1 %1679 }
 0x6db   :  { %v1687_v51 = vmul.f32 %v1680_v20, %v1647_v33 }
 0x6dc   :  { %v1643_v2 = vpop.permute.xlu0 %1642 }
 0x6dd   :  { %v1646_v28 = vmul.f32 %v1643_v2, %v3477_v38 }
 0x6de   :  { %v1692_v31 = vpop.permute.xlu1 %1691 }
 0x6df   :  { %v1699_v37 = vmul.f32 %v1692_v31, %v3479_v17 }
 0x6e0   :  { %v1685_v27 = vpop.permute.xlu0 %1684 }
 0x6e1   :  { %v1701_v12 = vadd.f32 %v1699_v37, %v1687_v51 }
 0x6e2   :  { %v1631_v19 = vpop.permute.xlu1 %1630 }
 0x6e3   :  { %v1634_v56 = vmul.f32 0.0, %v1631_v19 }
 0x6e4   :  { %v1697_v39 = vpop.permute.xlu0 %1696 }
 0x6e5   :  { %v1648_v45 = vadd.f32 %v1646_v28, %v1634_v56  ;;  %v1700_v53 = vmul.f32 %v1697_v39, %v3481_v25 }
 0x6e6   :  { %v1734_v46 = vpop.permute.xlu1 %1733 }
 0x6e7   :  { %v1688_v36 = vmul.f32 %v1685_v27, %v1648_v45  ;;  %v1741_v38 = vmul.f32 %v1734_v46, %v1701_v12 }
 0x6e8   :  { %v1739_v52 = vpop.permute.xlu0 %1738 }
 0x6e9   :  { %v1702_v34 = vadd.f32 %v1700_v53, %v1688_v36 }
 0x6ea   :  { %v1746_v55 = vpop.permute.xlu1 %1745 }
 0x6eb   :  { %v1753_v61 = vmul.f32 %v1746_v55, %v3483_v32  ;;  %v1742_v40 = vmul.f32 %v1739_v52, %v1702_v34 }
 0x6ec   :  { %v1751_v30 = vpop.permute.xlu0 %1750 }
 0x6ed   :  { %v1754_v41 = vmul.f32 %v1751_v30, %v3485_v5  ;;  %v1755_v60 = vadd.f32 %v1753_v61, %v1741_v38  ;;  %v2618_v5 = vld [vmem:[#allocation12 + $0x30] sm:$0xff]  }
 0x6ee   :  { %v1788_v1 = vpop.permute.xlu1 %1787 }
 0x6ef   :  { %v1756_v48 = vadd.f32 %v1754_v41, %v1742_v40  ;;  %v1795_v25 = vmul.f32 %v1788_v1, %v1755_v60 }
 0x6f0   :  { %v1793_v47 = vpop.permute.xlu0 %1792 }
 0x6f1   :  { %v1796_v9 = vmul.f32 %v1793_v47, %v1756_v48 }
 0x6f2   :  { %v1800_v29 = vpop.permute.xlu1 %1799 }
 0x6f3   :  { %v1807_v17 = vmul.f32 %v1800_v29, %v3487_v58  ;;  %v2619_v58 = vld [vmem:[#allocation12 + $0x28] sm:$0xff]  }
 0x6f4   :  { %v1805_v50 = vpop.permute.xlu0 %1804 }
 0x6f5   :  { %v1808_v16 = vmul.f32 %v1805_v50, %v3489_v15  ;;  %v1809_v7 = vadd.f32 %v1807_v17, %v1795_v25  ;;  %v2620_v15 = vld [vmem:[#allocation12 + $0x20] sm:$0xff]  }
 0x6f6   :  { %v1816_v54 = vpop.permute.xlu1 %1815 }
 0x6f7   :  { %v1810_v32 = vadd.f32 %v1808_v16, %v1796_v9  ;;  %v1823_v62 = vmul.f32 %v1816_v54, %v1809_v7 }
 0x6f8   :  { %v1821_v59 = vpop.permute.xlu0 %1820 }
 0x6f9   :  { %v1824_v13 = vmul.f32 %v1821_v59, %v1810_v32 }
 0x6fb   :  { %v1842_v14 = vpack.c.bf16 %v1824_v13, %v1823_v62 }
 0x6fd   :  { %2502 = vmatmul.mubr.bf16.vlgmr.msra.gmra.mxu0 %v1842_v14 }
 0x6fe   :  { %2526 = vmatpush3.bf16.msra.mxu0 %v2617_v11  ;;  %2541 = vmatprep.mubr.msk.bf16.mxu0 %vm2895_vm2, %v2892_v44 }
 0x6ff   :  { %2527 = vmatprep.subr.bf16.mxu0 %v2892_v44 }
 0x702   :  { %2528 = vmatpush3.bf16.msra.mxu0 %v2618_v5 }
 0x703   :  { %2529 = vmatprep.subr.bf16.mxu0 %v2892_v44 }
 0x706   :  { %2530 = vmatpush3.bf16.msra.mxu0 %v2619_v58 }
 0x707   :  { %2531 = vmatprep.subr.bf16.mxu0 %v2892_v44 }
 0x70a   :  { %2532 = vmatpush3.bf16.msra.mxu0 %v2620_v15 }
 0x70b   :  { %2533 = vmatprep.subr.bf16.mxu0 %v2892_v44 }
 0x70e   :  { %2534 = vmatpush3.bf16.msra.mxu0 %v2621_v42 }
 0x70f   :  { %2535 = vmatprep.subr.bf16.mxu0 %v2892_v44 }
 0x712   :  { %2536 = vmatpush3.bf16.msra.mxu0 %v2622_v43 }
 0x713   :  { %2537 = vmatprep.subr.bf16.mxu0 %v2892_v44 }
 0x716   :  { %2538 = vmatpush3.bf16.msra.mxu0 %v2623_v6 }
 0x717   :  { %2539 = vmatprep.subr.bf16.mxu0 %v2892_v44  ;;  %v2250_v44 = vld [vmem:[%s3553_s14] ss:$0 sm:$0xff] }
 0x71a   :  { %2540 = vmatpush3.bf16.msra.mxu0 %v2624_v63 }
 0x7bd   :  { %v1941_v4 = vpop.f32.mrf.mxu0 }
 0x7be   :  { %v2031_v22 = vadd.f32 %v3507_v21, %v1941_v4 }
 0x7bf   :  { %v2503_v35 = vpop.f32.mrf.mxu0 }
 0x7c0   :  { %v2044_v10 = vadd.f32 %v2249_v8, %v2031_v22 }
 0x7c1   :  { %v1944_v57 = vpop.f32.mrf.mxu0 }
 0x7c2   :  { %v2034_v3 = vadd.f32 %v3509_v0, %v1944_v57  ;;  %v2046_v49 = vmax.f32 %v2044_v10, 0.0 }
 0x7c3   :  { %v2504_v24 = vpop.f32.mrf.mxu0 }
 0x7c4   :  { %v2045_v26 = vadd.f32 %v2249_v8, %v2034_v3 }
 0x7c6   :  { %v2047_v20 = vmax.f32 %v2045_v26, 0.0 }
 0x7c8   :  { %v2048_v2 = vpack.c.bf16 %v2047_v20, %v2046_v49 }
 0x7ca   :  { %2542 = vmatmul.mubr.bf16.vlgmr.msra.gmra.mxu0 %v2048_v2 }
 0x88a   :  { %v2154_v21 = vpop.f32.mrf.mxu0 }
 0x88b   :  { %v2155_v31 = vadd.f32 %v2250_v44, %v2154_v21 }
 0x88c   :  { %v2543_v27 = vpop.f32.mrf.mxu0 }
 0x88d   :  { %2161 = vst [vmem:[#allocation14] sm:$0xff] %v2155_v31 }
 0x88e   :  { %v2157_v19 = vpop.f32.mrf.mxu0 }
 0x88f   :  { %v2158_v23 = vadd.f32 %v2250_v44, %v2157_v19 }
 0x890   :  { %v2544_v0 = vpop.f32.mrf.mxu0 }
 0x891   :  { %2162 = vst [vmem:[#allocation14 + $0x8] sm:$0xff] %v2158_v23 }
 0x892   :  { %2864 = shalt.err (!%p2861_p6)
}
 0x893   :  { %s2897_s26 = smov 128   ;;  %s2898_s14 = smov 8  }
 0x894   :  { %2174 = dma.vmem_to_hbm [thread:$0]  %s2169_s12, 256, %s3554_s15, [#allocation5], %s2897_s26, %s2897_s26, %s2898_s14  }
 0x895   :  { %2881 = dma.done.wait [#allocation5], 256  }
 0x896   :  { %2882 = vsyncadd [#allocation5], 4294967040 }
 0x897   :  { %2178 = vsyncpa [#allocation4], 1 }
 0x898   :  { %2179 = vsyncpa [#allocation7], 1 }
 0x899   :  { %2180 = vsyncpa [#allocation10], 1 }
 0x89a   :  { %2181 = vsyncpa [#allocation13], 1 }
 0x89b   :  { %2182 = vsyncpa [#allocation5], 1 }

</bundles_post_ra>
